<compile_context>
chip_gen: v7x
topology: tpu7x:2x2x1
jax: 0.10.0
libtpu: 0.0.40
codegen_flags: <defaults>
</compile_context>

<pallas_src>
import jax
import jax.numpy as jnp
from jax import lax
from jax.experimental import pallas as pl
from jax.experimental.pallas import tpu as pltpu

# ---------------- configuration ----------------------------------------------
N_FEATS = 32                  # module default is 64 (H=256); scaled-down demo
H = 4 * N_FEATS               # hidden width (= n_featsx4) -> 128, lane-aligned
N_DENOISE_RES = 5
TIMESTEPS = 5
MAX_PERIOD = TIMESTEPS * 10
D_IN = 2 * H + 1              # concat([c, t, x]) feature dim (reference only)
NEG_SLOPE = 0.1

BATCH = 256                   # demo batch
TM_MAX = 1024                 # max rows per grid step (per-step HBM ~1.25 MB)


# ---------------- Pallas kernel ----------------------------------------------
def _denoise_kernel(cx_ref, t_ref, w0_ref, w0t_ref, b0_ref, wr_ref, br_ref,
                    out_ref):
    """Fused 6-layer MLP for one (TM, H) row tile.

    cx_ref : (TM, 2H)   bf16   concat([c, x]) rows
    t_ref  : (TM, 1)    f32    normalized timestep (t / max_period)
    w0_ref : (2H, H)    bf16   first-layer weight rows for [c; x] (stacked)
    w0t_ref: (1, H)     f32    first-layer weight row matching `t` (rank-1)
    b0_ref : (1, H)     f32    first-layer bias
    wr_ref : (R, H, H)  bf16   stacked ResMLP weights (in, out)
    br_ref : (R, 1, H)  f32    stacked ResMLP biases
    out_ref: (TM, H)    bf16
    """
    # First layer: ONE K=2H MXU contraction (256-deep, matches v6e/v7x MXU),
    # f32 accumulation.
    h = jnp.dot(cx_ref[...], w0_ref[...], preferred_element_type=jnp.float32)
    # The "t" column is a rank-1 broadcast add on the VPU (never the MXU).
    h = h + t_ref[...] * w0t_ref[...]
    h = h + b0_ref[...]
    h = jnp.maximum(h, NEG_SLOPE * h)                 # LeakyReLU(0.1), 2 VALU ops

    def body(i, h):
        # bf16 matmul operand, f32 accumulate; dynamic layer index keeps
        # live ranges bounded when the row tile is large.
        h = jnp.dot(h.astype(jnp.bfloat16), wr_ref[i],
                    preferred_element_type=jnp.float32)
        h = h + br_ref[i]
        return jnp.maximum(h, NEG_SLOPE * h)

    h = lax.fori_loop(0, N_DENOISE_RES, body, h, unroll=True)
    out_ref[...] = h.astype(out_ref.dtype)


# ---------------- wrapper -----------------------------------------------------
def _prep_first_layer(w0):
    """Split/stack the (D_IN, H) first-layer weight by concat order [c, t, x]."""
    w0c = w0[:H, :]              # rows matching the `c` columns
    w0t = w0[H:H + 1, :]         # single row matching the `t` column
    w0x = w0[H + 1:, :]          # rows matching the `x` columns
    w0cx = jnp.concatenate([w0c, w0x], axis=0)        # (2H, H), matches [c, x]
    return w0cx, w0t


def _choose_tm(batch):
    """Fewest, largest grid steps (kernel is step-overhead / DMA bound).

    Single step up to TM_MAX rows: on v5e/v6e (1 TC) extra steps are pure
    sequential overhead.  On a v7x chip (2 TCs) pass tm = batch // 2
    explicitly so both TensorCores get one large tile.
    """
    tm = min(batch, TM_MAX)
    return ((tm + 7) // 8) * 8          # sublane multiple


def denoise_forward(x, t, c, params, tm=None, out_dtype=jnp.bfloat16):
    """JAX wrapper reproducing denoise.forward(x, t, c)."""
    # TODO(synk): set out_dtype=jnp.float32 if the downstream consumer needs
    # full-precision activations.
    w0, b0, wr, br = params
    w0cx, w0t = _prep_first_layer(w0)

    B = x.shape[0]
    if tm is None:
        tm = _choose_tm(B)

    t = t.astype(jnp.float32) / MAX_PERIOD
    t = t.reshape(-1, 1)

    # Fold the [c, x] concat into the bf16 cast (no extra HBM pass: the cast
    # already makes a copy).  Gives the kernel one lane-dense (B, 2H) operand.
    cx = jnp.concatenate([c, x], axis=1).astype(jnp.bfloat16)   # (B, 2H) bf16

    # Pad batch to a multiple of the row tile (no-op in the demo).
    Bp = ((B + tm - 1) // tm) * tm
    if Bp != B:
        cx = jnp.pad(cx, ((0, Bp - B), (0, 0)))
        t = jnp.pad(t, ((0, Bp - B), (0, 0)))

    # bf16 matmul operands (DMA bytes halved; MXU-native on v6e/v7x);
    # biases / t-row stay f32 (accumulation & epilogue are f32).
    w0cx_bf = w0cx.astype(jnp.bfloat16)
    wr_bf = wr.astype(jnp.bfloat16)

    flops = 2 * Bp * H * (2 * H + N_DENOISE_RES * H)            # ~2*7*B*H*H
    bytes_accessed = (
        Bp * 2 * H * 2 + Bp * 4 + Bp * H * 2                    # cx, t, out
        + (2 * H * H + N_DENOISE_RES * H * H) * 2               # bf16 weights
        + (2 * H + N_DENOISE_RES * H) * 4)                      # f32 biases/w0t

    grid = (Bp // tm,)
    out = pl.pallas_call(
        _denoise_kernel,
        out_shape=jax.ShapeDtypeStruct((Bp, H), out_dtype),
        grid_spec=pltpu.PrefetchScalarGridSpec(
            num_scalar_prefetch=0,
            grid=grid,
            in_specs=[
                pl.BlockSpec((tm, 2 * H), lambda i: (i, 0)),               # cx
                pl.BlockSpec((tm, 1), lambda i: (i, 0)),                   # t
                pl.BlockSpec((2 * H, H), lambda i: (0, 0)),                # w0cx
                pl.BlockSpec((1, H), lambda i: (0, 0)),                    # w0t
                pl.BlockSpec((1, H), lambda i: (0, 0)),                    # b0
                pl.BlockSpec((N_DENOISE_RES, H, H), lambda i: (0, 0, 0)),  # wr
                pl.BlockSpec((N_DENOISE_RES, 1, H), lambda i: (0, 0, 0)),  # br
            ],
            out_specs=pl.BlockSpec((tm, H), lambda i: (i, 0)),
        ),
        compiler_params=pltpu.CompilerParams(
            dimension_semantics=("parallel",)),   # shards M-tiles across TCs (v7x)
        cost_estimate=pl.CostEstimate(
            flops=flops, transcendentals=0, bytes_accessed=bytes_accessed),
    )(cx, t, w0cx_bf, w0t, b0, wr_bf, br)

    return out[:B]


# ---------------- deterministic parameter init --------------------------------
def init_params(key):
    """PyTorch-style uniform(-1/sqrt(fan_in), 1/sqrt(fan_in)) init (f32 masters)."""
    k0w, k0b, krw, krb = jax.random.split(key, 4)

    bound0 = 1.0 / jnp.sqrt(D_IN)
    w0 = jax.random.uniform(k0w, (D_IN, H), jnp.float32, -bound0, bound0)
    b0 = jax.random.uniform(k0b, (1, H), jnp.float32, -bound0, bound0)

    boundr = 1.0 / jnp.sqrt(H)
    wr = jax.random.uniform(krw, (N_DENOISE_RES, H, H), jnp.float32, -boundr, boundr)
    br = jax.random.uniform(krb, (N_DENOISE_RES, 1, H), jnp.float32, -boundr, boundr)

    return w0, b0, wr, br


# ---------------- pure-JAX f32 reference (matches PyTorch exactly) ------------
def denoise_ref(x, t, c, params):
    w0, b0, wr, br = params
    t = t.astype(jnp.float32) / MAX_PERIOD
    t = t.reshape(-1, 1)
    h = jnp.concatenate([c, t, x], axis=1)           # (B, 2H+1), order [c, t, x]
    h = h @ w0 + b0
    h = jnp.where(h > 0, h, NEG_SLOPE * h)
    for i in range(N_DENOISE_RES):
        h = h @ wr[i] + br[i]
        h = jnp.where(h > 0, h, NEG_SLOPE * h)
    return h


if __name__ == "__main__":
    key = jax.random.PRNGKey(0)
    kp, kx, kc, kt = jax.random.split(key, 4)

    params = init_params(kp)
    x = jax.random.normal(kx, (BATCH, H), jnp.float32)   # noisy latent
    c = jax.random.normal(kc, (BATCH, H), jnp.float32)   # condition
    t = jax.random.randint(kt, (BATCH,), 0, TIMESTEPS)   # integer timesteps

    out = denoise_forward(x, t, c, params)
    out = jax.block_until_ready(out)

    ref = denoise_ref(x, t, c, params)
    assert out.shape == (BATCH, H)
    # bf16 matmul operands + bf16 output (f32 accumulation) -> a few 1e-3
    # relative drift through 6 layers; use a max-normalized error metric.
    rel_err = float(jnp.max(jnp.abs(out.astype(jnp.float32) - ref))
                    / (jnp.max(jnp.abs(ref)) + 1e-8))
    assert rel_err < 5e-2, f"relative error too large: {rel_err}"

    print("KERNEL_OK")
</pallas_src>

<mosaic_0001>
module attributes {stable_mosaic.version = 11 : i64} {
  func.func @_denoise_kernel(%arg0: i32, %arg1: memref<256x256xbf16, #tpu.memory_space<vmem>>, %arg2: memref<256x1xf32, #tpu.memory_space<vmem>>, %arg3: memref<256x128xbf16, #tpu.memory_space<vmem>>, %arg4: memref<1x128xf32, #tpu.memory_space<vmem>>, %arg5: memref<1x128xf32, #tpu.memory_space<vmem>>, %arg6: memref<5x128x128xbf16, #tpu.memory_space<vmem>>, %arg7: memref<5x1x128xf32, #tpu.memory_space<vmem>>, %arg8: memref<256x128xbf16, #tpu.memory_space<vmem>>) attributes {dimension_semantics = [#tpu.dimension_semantics<parallel>], iteration_bounds = array<i64: 1>, scalar_prefetch = 0 : i64, scratch_operands = 0 : i64, tpu.core_type = #tpu.core_type<tc>, window_params = [{transform_indices = @transform_0, window_bounds = array<i64: 256, 256>}, {transform_indices = @transform_1, window_bounds = array<i64: 256, 1>}, {pipeline_mode = #tpu.pipeline_mode<synchronous>, transform_indices = @transform_2, window_bounds = array<i64: 256, 128>}, {pipeline_mode = #tpu.pipeline_mode<synchronous>, transform_indices = @transform_3, window_bounds = array<i64: 1, 128>}, {pipeline_mode = #tpu.pipeline_mode<synchronous>, transform_indices = @transform_4, window_bounds = array<i64: 1, 128>}, {pipeline_mode = #tpu.pipeline_mode<synchronous>, transform_indices = @transform_5, window_bounds = array<i64: 5, 128, 128>}, {pipeline_mode = #tpu.pipeline_mode<synchronous>, transform_indices = @transform_6, window_bounds = array<i64: 5, 1, 128>}, {transform_indices = @transform_7, window_bounds = array<i64: 256, 128>}]} {
    %c0 = arith.constant 0 : index
    %c0_0 = arith.constant 0 : index
    %0 = vector.load %arg1[%c0, %c0_0] : memref<256x256xbf16, #tpu.memory_space<vmem>>, vector<256x256xbf16>
    %c0_1 = arith.constant 0 : index
    %c0_2 = arith.constant 0 : index
    %1 = vector.load %arg3[%c0_1, %c0_2] : memref<256x128xbf16, #tpu.memory_space<vmem>>, vector<256x128xbf16>
    %cst = arith.constant dense<0.000000e+00> : vector<256x128xf32>
    %2 = tpu.matmul %0, %1, %cst {dimension_numbers = #tpu.dot_dimension_numbers<[1], [0], [0], [1], [0, 0, 1, 1], [], []>} : vector<256x256xbf16>, vector<256x128xbf16>, vector<256x128xf32> -> vector<256x128xf32>
    %c0_3 = arith.constant 0 : index
    %c0_4 = arith.constant 0 : index
    %3 = vector.load %arg2[%c0_3, %c0_4] : memref<256x1xf32, #tpu.memory_space<vmem>>, vector<256x1xf32>
    %c0_5 = arith.constant 0 : index
    %c0_6 = arith.constant 0 : index
    %4 = vector.load %arg4[%c0_5, %c0_6] : memref<1x128xf32, #tpu.memory_space<vmem>>, vector<1x128xf32>
    %5 = vector.broadcast %3 : vector<256x1xf32> to vector<256x128xf32>
    %6 = vector.broadcast %4 : vector<1x128xf32> to vector<256x128xf32>
    %7 = arith.mulf %5, %6 : vector<256x128xf32>
    %8 = arith.addf %2, %7 : vector<256x128xf32>
    %c0_7 = arith.constant 0 : index
    %c0_8 = arith.constant 0 : index
    %9 = vector.load %arg5[%c0_7, %c0_8] : memref<1x128xf32, #tpu.memory_space<vmem>>, vector<1x128xf32>
    %10 = vector.broadcast %9 : vector<1x128xf32> to vector<256x128xf32>
    %11 = arith.addf %8, %10 : vector<256x128xf32>
    %cst_9 = arith.constant 1.000000e-01 : f32
    %12 = vector.broadcast %cst_9 : f32 to vector<256x128xf32>
    %13 = arith.mulf %12, %11 : vector<256x128xf32>
    %14 = arith.maximumf %11, %13 : vector<256x128xf32>
    %c0_i32 = arith.constant 0 : i32
    %15 = arith.truncf %14 : vector<256x128xf32> to vector<256x128xbf16>
    %16 = arith.index_cast %c0_i32 : i32 to index
    %c0_10 = arith.constant 0 : index
    %c0_11 = arith.constant 0 : index
    %17 = vector.load %arg6[%16, %c0_10, %c0_11] : memref<5x128x128xbf16, #tpu.memory_space<vmem>>, vector<1x128x128xbf16>
    %18 = vector.shape_cast %17 : vector<1x128x128xbf16> to vector<128x128xbf16>
    %cst_12 = arith.constant dense<0.000000e+00> : vector<256x128xf32>
    %19 = tpu.matmul %15, %18, %cst_12 {dimension_numbers = #tpu.dot_dimension_numbers<[1], [0], [0], [1], [0, 0, 1, 1], [], []>} : vector<256x128xbf16>, vector<128x128xbf16>, vector<256x128xf32> -> vector<256x128xf32>
    %20 = arith.index_cast %c0_i32 : i32 to index
    %c0_13 = arith.constant 0 : index
    %c0_14 = arith.constant 0 : index
    %21 = vector.load %arg7[%20, %c0_13, %c0_14] : memref<5x1x128xf32, #tpu.memory_space<vmem>>, vector<1x1x128xf32>
    %22 = vector.shape_cast %21 : vector<1x1x128xf32> to vector<1x128xf32>
    %23 = vector.broadcast %22 : vector<1x128xf32> to vector<256x128xf32>
    %24 = arith.addf %19, %23 : vector<256x128xf32>
    %cst_15 = arith.constant 1.000000e-01 : f32
    %25 = vector.broadcast %cst_15 : f32 to vector<256x128xf32>
    %26 = arith.mulf %25, %24 : vector<256x128xf32>
    %27 = arith.maximumf %24, %26 : vector<256x128xf32>
    %c1_i32 = arith.constant 1 : i32
    %28 = arith.truncf %27 : vector<256x128xf32> to vector<256x128xbf16>
    %29 = arith.index_cast %c1_i32 : i32 to index
    %c0_16 = arith.constant 0 : index
    %c0_17 = arith.constant 0 : index
    %30 = vector.load %arg6[%29, %c0_16, %c0_17] : memref<5x128x128xbf16, #tpu.memory_space<vmem>>, vector<1x128x128xbf16>
    %31 = vector.shape_cast %30 : vector<1x128x128xbf16> to vector<128x128xbf16>
    %cst_18 = arith.constant dense<0.000000e+00> : vector<256x128xf32>
    %32 = tpu.matmul %28, %31, %cst_18 {dimension_numbers = #tpu.dot_dimension_numbers<[1], [0], [0], [1], [0, 0, 1, 1], [], []>} : vector<256x128xbf16>, vector<128x128xbf16>, vector<256x128xf32> -> vector<256x128xf32>
    %33 = arith.index_cast %c1_i32 : i32 to index
    %c0_19 = arith.constant 0 : index
    %c0_20 = arith.constant 0 : index
    %34 = vector.load %arg7[%33, %c0_19, %c0_20] : memref<5x1x128xf32, #tpu.memory_space<vmem>>, vector<1x1x128xf32>
    %35 = vector.shape_cast %34 : vector<1x1x128xf32> to vector<1x128xf32>
    %36 = vector.broadcast %35 : vector<1x128xf32> to vector<256x128xf32>
    %37 = arith.addf %32, %36 : vector<256x128xf32>
    %cst_21 = arith.constant 1.000000e-01 : f32
    %38 = vector.broadcast %cst_21 : f32 to vector<256x128xf32>
    %39 = arith.mulf %38, %37 : vector<256x128xf32>
    %40 = arith.maximumf %37, %39 : vector<256x128xf32>
    %c2_i32 = arith.constant 2 : i32
    %41 = arith.truncf %40 : vector<256x128xf32> to vector<256x128xbf16>
    %42 = arith.index_cast %c2_i32 : i32 to index
    %c0_22 = arith.constant 0 : index
    %c0_23 = arith.constant 0 : index
    %43 = vector.load %arg6[%42, %c0_22, %c0_23] : memref<5x128x128xbf16, #tpu.memory_space<vmem>>, vector<1x128x128xbf16>
    %44 = vector.shape_cast %43 : vector<1x128x128xbf16> to vector<128x128xbf16>
    %cst_24 = arith.constant dense<0.000000e+00> : vector<256x128xf32>
    %45 = tpu.matmul %41, %44, %cst_24 {dimension_numbers = #tpu.dot_dimension_numbers<[1], [0], [0], [1], [0, 0, 1, 1], [], []>} : vector<256x128xbf16>, vector<128x128xbf16>, vector<256x128xf32> -> vector<256x128xf32>
    %46 = arith.index_cast %c2_i32 : i32 to index
    %c0_25 = arith.constant 0 : index
    %c0_26 = arith.constant 0 : index
    %47 = vector.load %arg7[%46, %c0_25, %c0_26] : memref<5x1x128xf32, #tpu.memory_space<vmem>>, vector<1x1x128xf32>
    %48 = vector.shape_cast %47 : vector<1x1x128xf32> to vector<1x128xf32>
    %49 = vector.broadcast %48 : vector<1x128xf32> to vector<256x128xf32>
    %50 = arith.addf %45, %49 : vector<256x128xf32>
    %cst_27 = arith.constant 1.000000e-01 : f32
    %51 = vector.broadcast %cst_27 : f32 to vector<256x128xf32>
    %52 = arith.mulf %51, %50 : vector<256x128xf32>
    %53 = arith.maximumf %50, %52 : vector<256x128xf32>
    %c3_i32 = arith.constant 3 : i32
    %54 = arith.truncf %53 : vector<256x128xf32> to vector<256x128xbf16>
    %55 = arith.index_cast %c3_i32 : i32 to index
    %c0_28 = arith.constant 0 : index
    %c0_29 = arith.constant 0 : index
    %56 = vector.load %arg6[%55, %c0_28, %c0_29] : memref<5x128x128xbf16, #tpu.memory_space<vmem>>, vector<1x128x128xbf16>
    %57 = vector.shape_cast %56 : vector<1x128x128xbf16> to vector<128x128xbf16>
    %cst_30 = arith.constant dense<0.000000e+00> : vector<256x128xf32>
    %58 = tpu.matmul %54, %57, %cst_30 {dimension_numbers = #tpu.dot_dimension_numbers<[1], [0], [0], [1], [0, 0, 1, 1], [], []>} : vector<256x128xbf16>, vector<128x128xbf16>, vector<256x128xf32> -> vector<256x128xf32>
    %59 = arith.index_cast %c3_i32 : i32 to index
    %c0_31 = arith.constant 0 : index
    %c0_32 = arith.constant 0 : index
    %60 = vector.load %arg7[%59, %c0_31, %c0_32] : memref<5x1x128xf32, #tpu.memory_space<vmem>>, vector<1x1x128xf32>
    %61 = vector.shape_cast %60 : vector<1x1x128xf32> to vector<1x128xf32>
    %62 = vector.broadcast %61 : vector<1x128xf32> to vector<256x128xf32>
    %63 = arith.addf %58, %62 : vector<256x128xf32>
    %cst_33 = arith.constant 1.000000e-01 : f32
    %64 = vector.broadcast %cst_33 : f32 to vector<256x128xf32>
    %65 = arith.mulf %64, %63 : vector<256x128xf32>
    %66 = arith.maximumf %63, %65 : vector<256x128xf32>
    %c4_i32 = arith.constant 4 : i32
    %67 = arith.truncf %66 : vector<256x128xf32> to vector<256x128xbf16>
    %68 = arith.index_cast %c4_i32 : i32 to index
    %c0_34 = arith.constant 0 : index
    %c0_35 = arith.constant 0 : index
    %69 = vector.load %arg6[%68, %c0_34, %c0_35] : memref<5x128x128xbf16, #tpu.memory_space<vmem>>, vector<1x128x128xbf16>
    %70 = vector.shape_cast %69 : vector<1x128x128xbf16> to vector<128x128xbf16>
    %cst_36 = arith.constant dense<0.000000e+00> : vector<256x128xf32>
    %71 = tpu.matmul %67, %70, %cst_36 {dimension_numbers = #tpu.dot_dimension_numbers<[1], [0], [0], [1], [0, 0, 1, 1], [], []>} : vector<256x128xbf16>, vector<128x128xbf16>, vector<256x128xf32> -> vector<256x128xf32>
    %72 = arith.index_cast %c4_i32 : i32 to index
    %c0_37 = arith.constant 0 : index
    %c0_38 = arith.constant 0 : index
    %73 = vector.load %arg7[%72, %c0_37, %c0_38] : memref<5x1x128xf32, #tpu.memory_space<vmem>>, vector<1x1x128xf32>
    %74 = vector.shape_cast %73 : vector<1x1x128xf32> to vector<1x128xf32>
    %75 = vector.broadcast %74 : vector<1x128xf32> to vector<256x128xf32>
    %76 = arith.addf %71, %75 : vector<256x128xf32>
    %cst_39 = arith.constant 1.000000e-01 : f32
    %77 = vector.broadcast %cst_39 : f32 to vector<256x128xf32>
    %78 = arith.mulf %77, %76 : vector<256x128xf32>
    %79 = arith.maximumf %76, %78 : vector<256x128xf32>
    %c5_i32 = arith.constant 5 : i32
    %80 = arith.truncf %79 : vector<256x128xf32> to vector<256x128xbf16>
    %c0_40 = arith.constant 0 : index
    %c0_41 = arith.constant 0 : index
    %81 = vector.load %arg8[%c0_40, %c0_41] : memref<256x128xbf16, #tpu.memory_space<vmem>>, vector<256x128xbf16>
    tpu.vector_store %arg8[%c0_40, %c0_41], %80 {strides = array<i32>} : memref<256x128xbf16, #tpu.memory_space<vmem>>, vector<256x128xbf16>,
    return
  }
  func.func @transform_0(%arg0: i32) -> (i32, i32) {
    %c0_i32 = arith.constant 0 : i32
    %c0_i32_0 = arith.constant 0 : i32
    return %arg0, %c0_i32 : i32, i32
  }
  func.func @transform_1(%arg0: i32) -> (i32, i32) {
    %c0_i32 = arith.constant 0 : i32
    %c0_i32_0 = arith.constant 0 : i32
    return %arg0, %c0_i32 : i32, i32
  }
  func.func @transform_2(%arg0: i32) -> (i32, i32) {
    %c0_i32 = arith.constant 0 : i32
    %c0_i32_0 = arith.constant 0 : i32
    %c0_i32_1 = arith.constant 0 : i32
    return %c0_i32, %c0_i32_0 : i32, i32
  }
  func.func @transform_3(%arg0: i32) -> (i32, i32) {
    %c0_i32 = arith.constant 0 : i32
    %c0_i32_0 = arith.constant 0 : i32
    %c0_i32_1 = arith.constant 0 : i32
    return %c0_i32, %c0_i32_0 : i32, i32
  }
  func.func @transform_4(%arg0: i32) -> (i32, i32) {
    %c0_i32 = arith.constant 0 : i32
    %c0_i32_0 = arith.constant 0 : i32
    %c0_i32_1 = arith.constant 0 : i32
    return %c0_i32, %c0_i32_0 : i32, i32
  }
  func.func @transform_5(%arg0: i32) -> (i32, i32, i32) {
    %c0_i32 = arith.constant 0 : i32
    %c0_i32_0 = arith.constant 0 : i32
    %c0_i32_1 = arith.constant 0 : i32
    %c0_i32_2 = arith.constant 0 : i32
    return %c0_i32, %c0_i32_0, %c0_i32_1 : i32, i32, i32
  }
  func.func @transform_6(%arg0: i32) -> (i32, i32, i32) {
    %c0_i32 = arith.constant 0 : i32
    %c0_i32_0 = arith.constant 0 : i32
    %c0_i32_1 = arith.constant 0 : i32
    %c0_i32_2 = arith.constant 0 : i32
    return %c0_i32, %c0_i32_0, %c0_i32_1 : i32, i32, i32
  }
  func.func @transform_7(%arg0: i32) -> (i32, i32) {
    %c0_i32 = arith.constant 0 : i32
    %c0_i32_0 = arith.constant 0 : i32
    return %arg0, %c0_i32 : i32, i32
  }
}

</mosaic_0001>

<bundles_post_ra>
// kernel: tpu_custom_call.1
= control target key start
LH: loop header
LB: loop body
LE: loop exit
PB: predicated region body
PF: predicated region fallthrough
CT: control target
= control target key end

     0   :  { %12 = vsyncpa [#allocation3], 0  ;;  %s4165_s0 = inlined_call_operand.vmem [shape: bf16[256,256], index: 0, kind: input, shape index: {}]   ;;  %s4166_s1 = inlined_call_operand.vmem [shape: f32[256,1], index: 1, kind: input, shape index: {}]   ;;  %s4167_s2 = inlined_call_operand.hbm [shape: bf16[256,128], index: 2, kind: input, shape index: {}]   ;;  %s4168_s3 = inlined_call_operand.vmem [shape: f32[1,128], index: 3, kind: input, shape index: {}]   ;;  %s4169_s4 = inlined_call_operand.vmem [shape: f32[1,128], index: 4, kind: input, shape index: {}]   ;;  %s4170_s5 = inlined_call_operand.hbm [shape: bf16[5,128,128], index: 5, kind: input, shape index: {}]   ;;  %s4171_s6 = inlined_call_operand.vmem [shape: f32[5,1,128], index: 6, kind: input, shape index: {}]   ;;  %s4172_s7 = inlined_call_operand.hbm [shape: bf16[256,128], index: 7, kind: output, shape index: {}]  }
   0x1   :  { %13 = vsyncpa [#allocation6], 0 }
   0x2   :  { %14 = vsyncpa [#allocation4], 0  ;;  %s3547_s24 = smov [#allocation2]   ;;  %s3475_s28 = scalar_lea.hbm %s4167_s2, 2048 }
   0x3   :  { %s24_s25 = sshll.u32 %s3547_s24, 4  ;;  %p3476_p0 = scmp.ne.s32.totalorder %s4167_s2, %s3475_s28  ;;  %s25_s25 = int_to_ptr.vmem [resolvable:$true] %s24_s25 }
   0x4   :  { %p3479_p1 = scmp.lt.u32.totalorder %s3475_s28, %s4167_s2 }
   0x6   :  { %p3481_p2 = pnand %p3479_p1, %p3476_p0 }
   0x8   :  { %3484 = shalt.err (!%p3481_p2)
}
   0x9   :  { %s3485_s10 = scalar_lea.vmem %s25_s25, 2048  ;;  %p3490_p4 = scmp.lt.s32.totalorder %s25_s25, %s25_s25 }
   0xa   :  { %p3486_p3 = scmp.ne.s32.totalorder %s25_s25, %s3485_s10  ;;  %p3491_p5 = scmp.lt.s32.totalorder %s3485_s10, %s3485_s10 }
   0xc   :  { %p3492_p6 = por %p3491_p5, %p3490_p4 }
   0xe   :  { %p3493_p7 = pnand %p3492_p6, %p3486_p3 }
  0x10   :  { %3496 = shalt.err (!%p3493_p7)
}
  0x11   :  { %s3548_s11 = smov 64   ;;  %s3549_s12 = smov 4  }
  0x12   :  { %30 = dma.hbm_to_vmem [thread:$0]  %s4167_s2, 2048, %s25_s25, [#allocation3], %s3548_s11, %s3548_s11, %s3549_s12  }
  0x13   :  { %s3550_s15 = smov [#allocation5]   ;;  %s3497_s19 = scalar_lea.hbm %s4170_s5, 5120 }
  0x14   :  { %s40_s16 = sshll.u32 %s3550_s15, 4  ;;  %p3498_p8 = scmp.ne.s32.totalorder %s4170_s5, %s3497_s19  ;;  %s41_s16 = int_to_ptr.vmem [resolvable:$true] %s40_s16 }
  0x15   :  { %p3501_p9 = scmp.lt.u32.totalorder %s3497_s19, %s4170_s5 }
  0x17   :  { %p3503_p10 = pnand %p3501_p9, %p3498_p8 }
  0x19   :  { %3506 = shalt.err (!%p3503_p10)
}
  0x1a   :  { %s3507_s24 = scalar_lea.vmem %s41_s16, 5120  ;;  %p3512_p12 = scmp.lt.s32.totalorder %s41_s16, %s41_s16 }
  0x1b   :  { %p3508_p11 = scmp.ne.s32.totalorder %s41_s16, %s3507_s24  ;;  %p3513_p13 = scmp.lt.s32.totalorder %s3507_s24, %s3507_s24 }
  0x1d   :  { %p3514_p0 = por %p3513_p13, %p3512_p12 }
  0x1f   :  { %p3515_p1 = pnand %p3514_p0, %p3508_p11 }
  0x21   :  { %3518 = shalt.err (!%p3515_p1)
}
  0x22   :  { %46 = dma.hbm_to_vmem [thread:$0]  %s4170_s5, 5120, %s41_s16, [#allocation6], %s3548_s11, %s3548_s11, %s3549_s12  }
  0x23   :  { %3541 = dma.done.wait [#allocation3], 2048  }
  0x24   :  { %3542 = vsyncadd [#allocation3], 4294965248 }
  0x25   :  { %3543 = dma.done.wait [#allocation6], 5120  }
  0x26   :  { %3544 = vsyncadd [#allocation6], 4294962176  ;;  %v3551_v0 = vmov 0   ;;  %v3371_v1 = vld [vmem:[#allocation2 + $0x40] sm:$0xff]   ;;  %v3373_v3 = vld [vmem:[#allocation2 + $0x48] sm:$0xff]  }
  0x27   :  { %3370 = vset.pattern.permute.xlu1 %v3551_v0  ;;  %3369 = vset.pattern.permute.xlu0 %v3551_v0  ;;  %v3372_v2 = vld [vmem:[#allocation2] sm:$0xff]   ;;  %v3374_v4 = vld [vmem:[#allocation2 + $0x8] sm:$0xff]   ;;  %v3375_v5 = vld [vmem:[#allocation2 + $0x50] sm:$0xff]  }
  0x28   :  { %2875 = vmatprep.subr.bf16.mxu0 %v3371_v1  ;;  %3347 = vmatprep.subr.bf16.mxu1 %v3371_v1  ;;  %v3376_v6 = vld [vmem:[#allocation2 + $0x10] sm:$0xff]   ;;  %v3377_v7 = vld [vmem:[#allocation2 + $0x58] sm:$0xff]   ;;  %v3379_v9 = vld [vmem:[#allocation2 + $0x60] sm:$0xff]  }
  0x29   :  { %2876 = vmatpush3.bf16.msra.mxu0 %v3372_v2  ;;  %3355 = vmatpush3.bf16.msra.mxu1 %v3372_v2  ;;  %v3378_v8 = vld [vmem:[#allocation2 + $0x18] sm:$0xff]   ;;  %v3380_v10 = vld [vmem:[#allocation2 + $0x20] sm:$0xff]   ;;  %v3381_v11 = vld [vmem:[#allocation2 + $0x68] sm:$0xff]  }
  0x2a   :  { %2877 = vmatprep.subr.bf16.mxu0 %v3373_v3  ;;  %3348 = vmatprep.subr.bf16.mxu1 %v3373_v3  ;;  %v3389_v12 = vld [vmem:[%s4165_s0 + $0x4] ss:$8 sps:$4 sm:$0xff]   ;;  %v3383_v14 = vld [vmem:[#allocation2 + $0x70] sm:$0xff]   ;;  %v3385_v17 = vld [vmem:[#allocation2 + $0x78] sm:$0xff]  }
  0x2b   :  { %v3382_v13 = vld [vmem:[#allocation2 + $0x28] sm:$0xff]   ;;  %639 = vmatprep.mubr.bf16.mxu0 %v3389_v12  ;;  %v3384_v16 = vld [vmem:[#allocation2 + $0x30] sm:$0xff]   ;;  %v3386_v18 = vld [vmem:[#allocation2 + $0x38] sm:$0xff]  }
  0x2c   :  { %v3398_v15 = vld [vmem:[%s4165_s0 + $0xc4] ss:$8 sps:$4 sm:$0xff]   ;;  %v3387_v19 = vld [vmem:[%s4165_s0] ss:$8 sps:$4 sm:$0xff]   ;;  %v3390_v20 = vld [vmem:[%s4165_s0 + $0x14] ss:$8 sps:$4 sm:$0xff]  }
  0x2d   :  { %2878 = vmatpush3.bf16.msra.mxu0 %v3374_v4  ;;  %3356 = vmatpush3.bf16.msra.mxu1 %v3374_v4  ;;  %v3396_v21 = vld [vmem:[%s4165_s0 + $0xc0] ss:$8 sps:$4 sm:$0xff]   ;;  %v3402_v22 = vld [vmem:[%s4165_s0 + $0xd4] ss:$8 sps:$4 sm:$0xff]   ;;  %v3392_v27 = vld [vmem:[%s4165_s0 + $0x10] ss:$8 sps:$4 sm:$0xff]  }
  0x2e   :  { %2879 = vmatprep.subr.bf16.mxu0 %v3375_v5  ;;  %3349 = vmatprep.subr.bf16.mxu1 %v3375_v5  ;;  %v122_v23 = vld [vmem:[%s4166_s1 + $0x10] sm:$0xff]  ;;  %v120_v24 = vld [vmem:[%s4166_s1] sm:$0xff]  ;;  %v123_v25 = vld [vmem:[%s4166_s1 + $0x18] sm:$0xff] }
  0x2f   :  { %735 = vmatprep.mubr.bf16.mxu1 %v3398_v15  ;;  %165 = vperm.xlu1 %3370, %v122_v23   ;;  %v121_v26 = vld [vmem:[%s4166_s1 + $0x8] sm:$0xff]  ;;  %v3404_v29 = vld [vmem:[%s4165_s0 + $0xd0] ss:$8 sps:$4 sm:$0xff]   ;;  %v124_v32 = vld [vmem:[%s4166_s1 + $0x20] sm:$0xff] }
  0x30   :  { %155 = vperm.xlu0 %3369, %v120_v24   ;;  %v3393_v28 = vld [vmem:[%s4165_s0 + $0x24] ss:$8 sps:$4 sm:$0xff]   ;;  %v127_v33 = vld [vmem:[%s4166_s1 + $0x38] sm:$0xff]  ;;  %v126_v34 = vld [vmem:[%s4166_s1 + $0x30] sm:$0xff] }
  0x31   :  { %2880 = vmatpush3.bf16.msra.mxu0 %v3376_v6  ;;  %3357 = vmatpush3.bf16.msra.mxu1 %v3376_v6  ;;  %v125_v30 = vld [vmem:[%s4166_s1 + $0x28] sm:$0xff]  ;;  %v3399_v36 = vld [vmem:[%s4165_s0 + $0x34] ss:$8 sps:$4 sm:$0xff]   ;;  %v128_v40 = vld [vmem:[%s4166_s1 + $0x40] sm:$0xff] }
  0x32   :  { %2881 = vmatprep.subr.bf16.mxu0 %v3377_v7  ;;  %3350 = vmatprep.subr.bf16.mxu1 %v3377_v7  ;;  %v3408_v31 = vld [vmem:[%s4165_s0 + $0xe4] ss:$8 sps:$4 sm:$0xff]   ;;  %v3395_v35 = vld [vmem:[%s4165_s0 + $0x20] ss:$8 sps:$4 sm:$0xff]   ;;  %v3414_v38 = vld [vmem:[%s4165_s0 + $0xf4] ss:$8 sps:$4 sm:$0xff]  }
  0x33   :  { %170 = vperm.xlu1 %3370, %v123_v25   ;;  %v3410_v37 = vld [vmem:[%s4165_s0 + $0xe0] ss:$8 sps:$4 sm:$0xff]   ;;  %v131_v41 = vld [vmem:[%s4166_s1 + $0x58] sm:$0xff]  ;;  %v130_v44 = vld [vmem:[%s4166_s1 + $0x50] sm:$0xff] }
  0x34   :  { %160 = vperm.xlu0 %3369, %v121_v26   ;;  %v129_v39 = vld [vmem:[%s4166_s1 + $0x48] sm:$0xff]  ;;  %v3435_v42 = vld [vmem:[#allocation5] sm:$0xff]   ;;  %v3401_v45 = vld [vmem:[%s4165_s0 + $0x30] ss:$8 sps:$4 sm:$0xff]  }
  0x35   :  { %2882 = vmatpush3.bf16.msra.mxu0 %v3378_v8  ;;  %3358 = vmatpush3.bf16.msra.mxu1 %v3378_v8  ;;  %v3436_v43 = vld [vmem:[#allocation5 + $0x8] sm:$0xff]   ;;  %v3416_v47 = vld [vmem:[%s4165_s0 + $0xf0] ss:$8 sps:$4 sm:$0xff]   ;;  %v132_v49 = vld [vmem:[%s4166_s1 + $0x60] sm:$0xff] }
  0x36   :  { %2883 = vmatprep.subr.bf16.mxu0 %v3379_v9  ;;  %3351 = vmatprep.subr.bf16.mxu1 %v3379_v9  ;;  %v3405_v46 = vld [vmem:[%s4165_s0 + $0x44] ss:$8 sps:$4 sm:$0xff]   ;;  %v135_v50 = vld [vmem:[%s4166_s1 + $0x78] sm:$0xff]  ;;  %v134_v51 = vld [vmem:[%s4166_s1 + $0x70] sm:$0xff] }
  0x37   :  { %180 = vperm.xlu1 %3370, %v125_v30   ;;  %v133_v48 = vld [vmem:[%s4166_s1 + $0x68] sm:$0xff]  ;;  %v3411_v53 = vld [vmem:[%s4165_s0 + $0x54] ss:$8 sps:$4 sm:$0xff]   ;;  %v136_v55 = vld [vmem:[%s4166_s1 + $0x80] sm:$0xff] }
  0x38   :  { %175 = vperm.xlu0 %3369, %v124_v32   ;;  %v3407_v52 = vld [vmem:[%s4165_s0 + $0x40] ss:$8 sps:$4 sm:$0xff]   ;;  %v139_v56 = vld [vmem:[%s4166_s1 + $0x98] sm:$0xff]  ;;  %v138_v57 = vld [vmem:[%s4166_s1 + $0x90] sm:$0xff] }
  0x39   :  { %2884 = vmatpush3.bf16.msra.mxu0 %v3380_v10  ;;  %3359 = vmatpush3.bf16.msra.mxu1 %v3380_v10  ;;  %v137_v54 = vld [vmem:[%s4166_s1 + $0x88] sm:$0xff]  ;;  %v3413_v58 = vld [vmem:[%s4165_s0 + $0x50] ss:$8 sps:$4 sm:$0xff]   ;;  %v140_v61 = vld [vmem:[%s4166_s1 + $0xa0] sm:$0xff] }
  0x3a   :  { %2885 = vmatprep.subr.bf16.mxu0 %v3381_v11  ;;  %3352 = vmatprep.subr.bf16.mxu1 %v3381_v11  ;;  %v3417_v59 = vld [vmem:[%s4165_s0 + $0x64] ss:$8 sps:$4 sm:$0xff]   ;;  %v143_v62 = vld [vmem:[%s4166_s1 + $0xb8] sm:$0xff]  ;;  %v142_v63 = vld [vmem:[%s4166_s1 + $0xb0] sm:$0xff] }
  0x3b   :  { %190 = vperm.xlu1 %3370, %v127_v33   ;;  %v141_v60 = vld [vmem:[%s4166_s1 + $0xa8] sm:$0xff]  ;;  %v3420_v1 = vld [vmem:[%s4165_s0 + $0x74] ss:$8 sps:$4 sm:$0xff]   ;;  %v144_v3 = vld [vmem:[%s4166_s1 + $0xc0] sm:$0xff] }
  0x3c   :  { %185 = vperm.xlu0 %3369, %v126_v34   ;;  %v3419_v0 = vld [vmem:[%s4165_s0 + $0x60] ss:$8 sps:$4 sm:$0xff]   ;;  %v147_v4 = vld [vmem:[%s4166_s1 + $0xd8] sm:$0xff]  ;;  %v146_v5 = vld [vmem:[%s4166_s1 + $0xd0] sm:$0xff] }
  0x3d   :  { %2886 = vmatpush3.bf16.msra.mxu0 %v3382_v13  ;;  %3360 = vmatpush3.bf16.msra.mxu1 %v3382_v13  ;;  %v145_v2 = vld [vmem:[%s4166_s1 + $0xc8] sm:$0xff]  ;;  %v3422_v6 = vld [vmem:[%s4165_s0 + $0x70] ss:$8 sps:$4 sm:$0xff]   ;;  %v148_v9 = vld [vmem:[%s4166_s1 + $0xe0] sm:$0xff] }
  0x3e   :  { %2887 = vmatprep.subr.bf16.mxu0 %v3383_v14  ;;  %3353 = vmatprep.subr.bf16.mxu1 %v3383_v14  ;;  %v3423_v7 = vld [vmem:[%s4165_s0 + $0x84] ss:$8 sps:$4 sm:$0xff]   ;;  %v151_v10 = vld [vmem:[%s4166_s1 + $0xf8] sm:$0xff]  ;;  %v150_v11 = vld [vmem:[%s4166_s1 + $0xf0] sm:$0xff] }
  0x3f   :  { %200 = vperm.xlu1 %3370, %v129_v39   ;;  %v149_v8 = vld [vmem:[%s4166_s1 + $0xe8] sm:$0xff]  ;;  %v3426_v13 = vld [vmem:[%s4165_s0 + $0x94] ss:$8 sps:$4 sm:$0xff]   ;;  %v3428_v14 = vld [vmem:[%s4165_s0 + $0x90] ss:$8 sps:$4 sm:$0xff]  }
  0x40   :  { %195 = vperm.xlu0 %3369, %v128_v40   ;;  %v3425_v12 = vld [vmem:[%s4165_s0 + $0x80] ss:$8 sps:$4 sm:$0xff]   ;;  %v3429_v15 = vld [vmem:[%s4165_s0 + $0xa4] ss:$8 sps:$4 sm:$0xff]   ;;  %v3441_v23 = vld [vmem:[#allocation5 + $0x30] sm:$0xff]  }
  0x41   :  { %2888 = vmatpush3.bf16.msra.mxu0 %v3384_v16  ;;  %3361 = vmatpush3.bf16.msra.mxu1 %v3384_v16  ;;  %v3431_v16 = vld [vmem:[%s4165_s0 + $0xa0] ss:$8 sps:$4 sm:$0xff]   ;;  %v3442_v24 = vld [vmem:[#allocation5 + $0x38] sm:$0xff]  }
  0x42   :  { %2889 = vmatprep.subr.bf16.mxu0 %v3385_v17  ;;  %3354 = vmatprep.subr.bf16.mxu1 %v3385_v17  ;;  %v3432_v17 = vld [vmem:[%s4165_s0 + $0xb4] ss:$8 sps:$4 sm:$0xff]  }
  0x43   :  { %210 = vperm.xlu1 %3370, %v131_v41  }
  0x44   :  { %205 = vperm.xlu0 %3369, %v130_v44  }
  0x45   :  { %2890 = vmatpush3.bf16.msra.mxu0 %v3386_v18  ;;  %3362 = vmatpush3.bf16.msra.mxu1 %v3386_v18  ;;  %v3437_v18 = vld [vmem:[#allocation5 + $0x10] sm:$0xff]  }
  0x46   :  { %3107 = vmatprep.subr.bf16.mxu1 %v3435_v42 }
  0x47   :  { %220 = vperm.xlu1 %3370, %v133_v48  }
  0x48   :  { %640 = vmatmul.mubr.bf16.vlgmr.msra.gmra.mrb[0].mxu0 %v3387_v19  ;;  %736 = vmatmul.mubr.bf16.vlgmr.msra.gmra.mrb[0].mxu1 %v3396_v21  ;;  %v3434_v19 = vld [vmem:[%s4165_s0 + $0xb0] ss:$8 sps:$4 sm:$0xff]   ;;  %v3439_v21 = vld [vmem:[#allocation5 + $0x20] sm:$0xff]  }
  0x49   :  { %647 = vmatprep.mubr.bf16.mxu0 %v3390_v20  ;;  %743 = vmatprep.mubr.bf16.mxu1 %v3402_v22  ;;  %v3438_v20 = vld [vmem:[#allocation5 + $0x18] sm:$0xff]   ;;  %v3440_v22 = vld [vmem:[#allocation5 + $0x28] sm:$0xff]  }
  0x4a   :  { %3108 = vmatpush3.bf16.msra.mxu1 %v3435_v42  ;;  %215 = vperm.xlu0 %3369, %v132_v49  }
  0x4b   :  { %3109 = vmatprep.subr.bf16.mxu1 %v3436_v43  ;;  %230 = vperm.xlu1 %3370, %v135_v50   ;;  %v3861_v50 = vld [vmem:[%s4168_s3] ss:$0 sm:$0xff] }
  0x4e   :  { %3110 = vmatpush3.bf16.msra.mxu1 %v3436_v43  ;;  %225 = vperm.xlu0 %3369, %v134_v51  }
  0x4f   :  { %240 = vperm.xlu1 %3370, %v137_v54   ;;  %3111 = vmatprep.subr.bf16.mxu1 %v3437_v18 }
  0x50   :  { %648 = vmatmul.mubr.bf16.gmra.mrb[4].mxu0 %v3392_v27  ;;  %744 = vmatmul.mubr.bf16.gmra.mrb[4].mxu1 %v3404_v29 }
  0x51   :  { %655 = vmatprep.mubr.bf16.mxu0 %v3393_v28  ;;  %751 = vmatprep.mubr.bf16.mxu1 %v3408_v31 }
  0x52   :  { %235 = vperm.xlu0 %3369, %v136_v55   ;;  %3112 = vmatpush3.bf16.msra.mxu1 %v3437_v18 }
  0x53   :  { %250 = vperm.xlu1 %3370, %v139_v56   ;;  %3113 = vmatprep.subr.bf16.mxu1 %v3438_v20 }
  0x56   :  { %245 = vperm.xlu0 %3369, %v138_v57   ;;  %3114 = vmatpush3.bf16.msra.mxu1 %v3438_v20 }
  0x57   :  { %260 = vperm.xlu1 %3370, %v141_v60   ;;  %3115 = vmatprep.subr.bf16.mxu1 %v3439_v21 }
  0x58   :  { %656 = vmatmul.mubr.bf16.gmra.mrb[8].mxu0 %v3395_v35  ;;  %752 = vmatmul.mubr.bf16.gmra.mrb[8].mxu1 %v3410_v37 }
  0x59   :  { %663 = vmatprep.mubr.bf16.mxu0 %v3399_v36  ;;  %759 = vmatprep.mubr.bf16.mxu1 %v3414_v38 }
  0x5a   :  { %255 = vperm.xlu0 %3369, %v140_v61   ;;  %3116 = vmatpush3.bf16.msra.mxu1 %v3439_v21 }
  0x5b   :  { %270 = vperm.xlu1 %3370, %v143_v62   ;;  %3117 = vmatprep.subr.bf16.mxu1 %v3440_v22  ;;  %v3869_v62 = vld [vmem:[%s4169_s4] ss:$0 sm:$0xff] }
  0x5e   :  { %265 = vperm.xlu0 %3369, %v142_v63   ;;  %3118 = vmatpush3.bf16.msra.mxu1 %v3440_v22 }
  0x5f   :  { %280 = vperm.xlu1 %3370, %v145_v2   ;;  %3119 = vmatprep.subr.bf16.mxu1 %v3441_v23 }
  0x60   :  { %664 = vmatmul.mubr.bf16.gmra.mrb[12].mxu0 %v3401_v45  ;;  %760 = vmatmul.mubr.bf16.gmra.mrb[12].mxu1 %v3416_v47  ;;  %v3851_v47 = vld [vmem:[#allocation5 + $0x40] sm:$0xff]  }
  0x61   :  { %671 = vmatprep.mubr.bf16.mxu0 %v3405_v46 }
  0x62   :  { %275 = vperm.xlu0 %3369, %v144_v3   ;;  %3120 = vmatpush3.bf16.msra.mxu1 %v3441_v23 }
  0x63   :  { %290 = vperm.xlu1 %3370, %v147_v4   ;;  %3121 = vmatprep.subr.bf16.mxu1 %v3442_v24 }
  0x66   :  { %285 = vperm.xlu0 %3369, %v146_v5   ;;  %3122 = vmatpush3.bf16.msra.mxu1 %v3442_v24 }
  0x67   :  { %300 = vperm.xlu1 %3370, %v149_v8   ;;  %3155 = vmatprep.subr.bf16.mxu1 %v3851_v47 }
  0x68   :  { %672 = vmatmul.mubr.bf16.gmra.mrb[16].mxu0 %v3407_v52 }
  0x69   :  { %679 = vmatprep.mubr.bf16.mxu0 %v3411_v53 }
  0x6a   :  { %295 = vperm.xlu0 %3369, %v148_v9  }
  0x6b   :  { %310 = vperm.xlu1 %3370, %v151_v10  }
  0x6e   :  { %305 = vperm.xlu0 %3369, %v150_v11  }
  0x70   :  { %680 = vmatmul.mubr.bf16.gmra.mrb[20].mxu0 %v3413_v58 }
  0x71   :  { %687 = vmatprep.mubr.bf16.mxu0 %v3417_v59 }
  0x78   :  { %688 = vmatmul.mubr.bf16.gmra.mrb[24].mxu0 %v3419_v0 }
  0x79   :  { %695 = vmatprep.mubr.bf16.mxu0 %v3420_v1 }
  0x80   :  { %696 = vmatmul.mubr.bf16.gmra.mrb[28].mxu0 %v3422_v6 }
  0x81   :  { %703 = vmatprep.mubr.bf16.mxu0 %v3423_v7 }
  0x88   :  { %704 = vmatmul.mubr.bf16.gmra.mrb[32].mxu0 %v3425_v12 }
  0x89   :  { %711 = vmatprep.mubr.bf16.mxu0 %v3426_v13 }
  0x90   :  { %712 = vmatmul.mubr.bf16.gmra.mrb[36].mxu0 %v3428_v14 }
  0x91   :  { %719 = vmatprep.mubr.bf16.mxu0 %v3429_v15 }
  0x98   :  { %720 = vmatmul.mubr.bf16.gmra.mrb[40].mxu0 %v3431_v16 }
  0x99   :  { %727 = vmatprep.mubr.bf16.mxu0 %v3432_v17 }
  0xa0   :  { %728 = vmatmul.mubr.bf16.gmra.mrb[44].mxu0 %v3434_v19 }
  0xae   :  { %v166_v25 = vpop.permute.xlu1 %165 }
  0xaf   :  { %v156_v26 = vpop.permute.xlu0 %155  ;;  %v321_v13 = vmul.f32 %v3861_v50, %v166_v25 }
  0xb0   :  { %v319_v52 = vmul.f32 %v3861_v50, %v156_v26 }
  0xb2   :  { %v171_v27 = vpop.permute.xlu1 %170 }
  0xb3   :  { %v161_v28 = vpop.permute.xlu0 %160  ;;  %v322_v23 = vmul.f32 %v3861_v50, %v171_v27 }
  0xb4   :  { %v320_v58 = vmul.f32 %v3861_v50, %v161_v28 }
  0xb6   :  { %v3815_v29 = vpop.permute.xlu1 %180 }
  0xb7   :  { %v3817_v30 = vpop.permute.xlu0 %175 }
  0xba   :  { %v3819_v31 = vpop.permute.xlu1 %190 }
  0xbb   :  { %v3821_v32 = vpop.permute.xlu0 %185 }
  0xbe   :  { %v3823_v33 = vpop.permute.xlu1 %200 }
  0xbf   :  { %v3825_v34 = vpop.permute.xlu0 %195 }
  0xc2   :  { %v3827_v35 = vpop.permute.xlu1 %210 }
  0xc3   :  { %v3829_v36 = vpop.permute.xlu0 %205 }
  0xc6   :  { %v3831_v37 = vpop.permute.xlu1 %220 }
  0xc9   :  { %v3833_v38 = vpop.permute.xlu0 %215 }
  0xca   :  { %v3835_v39 = vpop.permute.xlu1 %230 }
  0xcd   :  { %v3837_v40 = vpop.permute.xlu0 %225 }
  0xce   :  { %v3839_v41 = vpop.permute.xlu1 %240 }
  0xd1   :  { %v3841_v42 = vpop.permute.xlu0 %235 }
  0xd2   :  { %v3843_v43 = vpop.permute.xlu1 %250 }
  0xd5   :  { %v3845_v44 = vpop.permute.xlu0 %245 }
  0xd6   :  { %v3847_v45 = vpop.permute.xlu1 %260 }
  0xd9   :  { %v3849_v46 = vpop.permute.xlu0 %255 }
  0xda   :  { %v3853_v48 = vpop.permute.xlu1 %270 }
  0xdd   :  { %v3855_v49 = vpop.permute.xlu0 %265 }
  0xde   :  { %v281_v51 = vpop.permute.xlu1 %280 }
  0xdf   :  { %v344_v2 = vmul.f32 %v3861_v50, %v281_v51 }
  0xe1   :  { %v276_v54 = vpop.permute.xlu0 %275 }
  0xe2   :  { %v343_v57 = vmul.f32 %v3861_v50, %v276_v54  ;;  %v291_v12 = vpop.permute.xlu1 %290 }
  0xe5   :  { %v286_v17 = vpop.permute.xlu0 %285 }
  0xe6   :  { %v345_v22 = vmul.f32 %v3861_v50, %v286_v17 }
 0x11b   :  { %v2891_v53 = vpop.f32.mrb[0].mxu0  ;;  %v2963_v56 = vpop.f32.mrb[0].mxu1 }
 0x11c   :  { %v2892_v55 = vpop.f32.mrb[1].mxu0  ;;  %v2964_v61 = vpop.f32.mrb[1].mxu1 }
 0x11d   :  { %v2893_v59 = vadd.f32 %v2892_v55, %v2891_v53  ;;  %v2894_v60 = vpop.f32.mrb[2].mxu0  ;;  %v2965_v0 = vadd.f32 %v2964_v61, %v2963_v56  ;;  %v2966_v1 = vpop.f32.mrb[2].mxu1  ;;  %v346_v55 = vmul.f32 %v3861_v50, %v291_v12 }
 0x11e   :  { %v2895_v63 = vpop.f32.mrb[3].mxu0  ;;  %v2967_v5 = vpop.f32.mrb[3].mxu1 }
 0x11f   :  { %v642_v3 = vadd.f32 %v2893_v59, %v319_v52  ;;  %v2896_v4 = vadd.f32 %v2895_v63, %v2894_v60  ;;  %v738_v6 = vadd.f32 %v2965_v0, %v343_v57  ;;  %v2968_v7 = vadd.f32 %v2967_v5, %v2966_v1  ;;  %v296_v12 = vpop.permute.xlu0 %295 }
 0x120   :  { %v347_v17 = vmul.f32 %v3861_v50, %v296_v12 }
 0x121   :  { %v775_v8 = vadd.f32 %v3869_v62, %v642_v3  ;;  %v645_v9 = vadd.f32 %v2896_v4, %v320_v58  ;;  %v799_v10 = vadd.f32 %v3869_v62, %v738_v6  ;;  %v741_v11 = vadd.f32 %v2968_v7, %v344_v2  ;;  %v301_v6 = vpop.permute.xlu1 %300 }
 0x123   :  { %v807_v14 = vmul.f32 0.1, %v775_v8  ;;  %v776_v15 = vadd.f32 %v3869_v62, %v645_v9  ;;  %v2897_v16 = vpop.f32.mrb[4].mxu0  ;;  %v831_v19 = vmul.f32 0.1, %v799_v10  ;;  %v800_v20 = vadd.f32 %v3869_v62, %v741_v11  ;;  %v2969_v21 = vpop.f32.mrb[4].mxu1 }
 0x124   :  { %v2898_v18 = vpop.f32.mrb[5].mxu0  ;;  %v2970_v51 = vpop.f32.mrb[5].mxu1  ;;  %v323_v9 = vmul.f32 %v3861_v50, %v3817_v30 }
 0x125   :  { %v808_v24 = vmul.f32 0.1, %v776_v15  ;;  %v2899_v26 = vadd.f32 %v2898_v18, %v2897_v16  ;;  %v2900_v28 = vpop.f32.mrb[6].mxu0  ;;  %v832_v25 = vmul.f32 0.1, %v800_v20  ;;  %v2971_v53 = vadd.f32 %v2970_v51, %v2969_v21  ;;  %v2972_v54 = vpop.f32.mrb[6].mxu1 }
 0x126   :  { %v2901_v52 = vpop.f32.mrb[7].mxu0  ;;  %v863_v56 = vmax.f32 %v799_v10, %v831_v19  ;;  %v839_v59 = vmax.f32 %v775_v8, %v807_v14  ;;  %v2973_v61 = vpop.f32.mrb[7].mxu1  ;;  %v324_v18 = vmul.f32 %v3861_v50, %v3815_v29 }
 0x127   :  { %v650_v57 = vadd.f32 %v2899_v26, %v321_v13  ;;  %v2902_v58 = vadd.f32 %v2901_v52, %v2900_v28  ;;  %v840_v60 = vmax.f32 %v776_v15, %v808_v24  ;;  %v746_v63 = vadd.f32 %v2971_v53, %v345_v22 }
 0x128   :  { %v2974_v0 = vadd.f32 %v2973_v61, %v2972_v54  ;;  %v864_v1 = vmax.f32 %v800_v20, %v832_v25  ;;  %v348_v28 = vmul.f32 %v3861_v50, %v301_v6  ;;  %v306_v61 = vpop.permute.xlu0 %305  ;;  %v311_v6 = vpop.permute.xlu1 %310 }
 0x129   :  { %v777_v27 = vadd.f32 %v3869_v62, %v650_v57  ;;  %v653_v2 = vadd.f32 %v2902_v58, %v322_v23  ;;  %v871_v3 = vpack.c.bf16 %v840_v60, %v839_v59  ;;  %v801_v4 = vadd.f32 %v3869_v62, %v746_v63  ;;  %v3444_v63 = vld [vmem:[#allocation5 + $0x48] sm:$0xff]  }
 0x12a   :  { %v749_v5 = vadd.f32 %v2974_v0, %v346_v55  ;;  %v3882_v7 = vpack.c.bf16 %v864_v1, %v863_v56  ;;  %v349_v12 = vmul.f32 %v3861_v50, %v306_v61 }
 0x12b   :  { %v809_v10 = vmul.f32 0.1, %v777_v27  ;;  %v778_v8 = vadd.f32 %v3869_v62, %v653_v2  ;;  %v2903_v11 = vpop.f32.mrb[8].mxu0  ;;  %3123 = vmatprep.mubr.bf16.mxu1 %v871_v3  ;;  %v833_v14 = vmul.f32 0.1, %v801_v4  ;;  %v2975_v16 = vpop.f32.mrb[8].mxu1 }
 0x12c   :  { %v2904_v13 = vpop.f32.mrb[9].mxu0  ;;  %v802_v15 = vadd.f32 %v3869_v62, %v749_v5  ;;  %v2976_v30 = vpop.f32.mrb[9].mxu1 }
 0x12d   :  { %v810_v19 = vmul.f32 0.1, %v778_v8  ;;  %v2905_v20 = vadd.f32 %v2904_v13, %v2903_v11  ;;  %v2906_v21 = vpop.f32.mrb[10].mxu0  ;;  %v2977_v24 = vadd.f32 %v2976_v30, %v2975_v16  ;;  %v2978_v26 = vpop.f32.mrb[10].mxu1  ;;  %v865_v51 = vmax.f32 %v801_v4, %v833_v14 }
 0x12e   :  { %v2907_v22 = vpop.f32.mrb[11].mxu0  ;;  %v834_v23 = vmul.f32 0.1, %v802_v15  ;;  %v841_v52 = vmax.f32 %v777_v27, %v809_v10  ;;  %v2979_v55 = vpop.f32.mrb[11].mxu1  ;;  %v325_v27 = vmul.f32 %v3861_v50, %v3821_v32  ;;  %v326_v13 = vmul.f32 %v3861_v50, %v3819_v31 }
 0x12f   :  { %v842_v25 = vmax.f32 %v778_v8, %v810_v19  ;;  %v658_v53 = vadd.f32 %v2905_v20, %v323_v9  ;;  %v2908_v54 = vadd.f32 %v2907_v22, %v2906_v21  ;;  %v754_v56 = vadd.f32 %v2977_v24, %v347_v17  ;;  %v3445_v17 = vld [vmem:[#allocation5 + $0x50] sm:$0xff]  }
 0x130   :  { %v2980_v57 = vadd.f32 %v2979_v55, %v2978_v26  ;;  %v866_v58 = vmax.f32 %v802_v15, %v834_v23  ;;  %v350_v30 = vmul.f32 %v3861_v50, %v311_v6  ;;  %v3446_v55 = vld [vmem:[#allocation5 + $0x58] sm:$0xff]   ;;  %v3447_v6 = vld [vmem:[#allocation5 + $0x60] sm:$0xff]  }
 0x131   :  { %v872_v29 = vpack.c.bf16 %v842_v25, %v841_v52  ;;  %v779_v59 = vadd.f32 %v3869_v62, %v658_v53  ;;  %v661_v60 = vadd.f32 %v2908_v54, %v324_v18  ;;  %v803_v0 = vadd.f32 %v3869_v62, %v754_v56 }
 0x132   :  { %v757_v1 = vadd.f32 %v2980_v57, %v348_v28  ;;  %v3894_v2 = vpack.c.bf16 %v866_v58, %v865_v51 }
 0x133   :  { %v811_v3 = vmul.f32 0.1, %v779_v59  ;;  %v780_v4 = vadd.f32 %v3869_v62, %v661_v60  ;;  %v2909_v5 = vpop.f32.mrb[12].mxu0  ;;  %3124 = vmatmul.mubr.bf16.vlgmr.msra.gmra.mrb[16].mxu1 %v872_v29  ;;  %v835_v10 = vmul.f32 0.1, %v803_v0  ;;  %v2981_v11 = vpop.f32.mrb[12].mxu1  ;;  %v327_v29 = vmul.f32 %v3861_v50, %v3825_v34 }
 0x134   :  { %v2910_v9 = vpop.f32.mrb[13].mxu0  ;;  %v804_v8 = vadd.f32 %v3869_v62, %v757_v1  ;;  %3156 = vmatpush3.bf16.msra.mxu1 %v3851_v47  ;;  %v2982_v16 = vpop.f32.mrb[13].mxu1 }
 0x135   :  { %v812_v14 = vmul.f32 0.1, %v780_v4  ;;  %v2911_v32 = vadd.f32 %v2910_v9, %v2909_v5  ;;  %v2912_v15 = vpop.f32.mrb[14].mxu0  ;;  %3157 = vmatprep.subr.bf16.mxu1 %v3444_v63  ;;  %v2983_v20 = vadd.f32 %v2982_v16, %v2981_v11  ;;  %v2984_v21 = vpop.f32.mrb[14].mxu1  ;;  %v867_v22 = vmax.f32 %v803_v0, %v835_v10 }
 0x136   :  { %v2913_v18 = vpop.f32.mrb[15].mxu0  ;;  %v836_v19 = vmul.f32 0.1, %v804_v8  ;;  %v843_v26 = vmax.f32 %v779_v59, %v811_v3  ;;  %v2985_v28 = vpop.f32.mrb[15].mxu1 }
 0x137   :  { %v666_v23 = vadd.f32 %v2911_v32, %v325_v27  ;;  %v2914_v24 = vadd.f32 %v2913_v18, %v2912_v15  ;;  %v844_v47 = vmax.f32 %v780_v4, %v812_v14  ;;  %v762_v51 = vadd.f32 %v2983_v20, %v349_v12 }
 0x138   :  { %v2986_v31 = vadd.f32 %v2985_v28, %v2984_v21  ;;  %v868_v52 = vmax.f32 %v804_v8, %v836_v19  ;;  %3158 = vmatpush3.bf16.msra.mxu1 %v3444_v63  ;;  %v328_v27 = vmul.f32 %v3861_v50, %v3823_v33 }
 0x139   :  { %v781_v25 = vadd.f32 %v3869_v62, %v666_v23  ;;  %v669_v53 = vadd.f32 %v2914_v24, %v326_v13  ;;  %v873_v54 = vpack.c.bf16 %v844_v47, %v843_v26  ;;  %3159 = vmatprep.subr.bf16.mxu1 %v3445_v17  ;;  %v805_v56 = vadd.f32 %v3869_v62, %v762_v51 }
 0x13a   :  { %v765_v57 = vadd.f32 %v2986_v31, %v350_v30  ;;  %v3907_v58 = vpack.c.bf16 %v868_v52, %v867_v22  ;;  %v330_v30 = vmul.f32 %v3861_v50, %v3827_v35  ;;  %v331_v35 = vmul.f32 %v3861_v50, %v3833_v38 }
 0x13b   :  { %v813_v59 = vmul.f32 0.1, %v781_v25  ;;  %v782_v60 = vadd.f32 %v3869_v62, %v669_v53  ;;  %v2915_v61 = vpop.f32.mrb[16].mxu0  ;;  %3127 = vmatprep.mubr.bf16.mxu1 %v873_v54  ;;  %v837_v0 = vmul.f32 0.1, %v805_v56 }
 0x13c   :  { %v2916_v63 = vpop.f32.mrb[17].mxu0  ;;  %v806_v1 = vadd.f32 %v3869_v62, %v765_v57  ;;  %3160 = vmatpush3.bf16.msra.mxu1 %v3445_v17  ;;  %v329_v17 = vmul.f32 %v3861_v50, %v3829_v36 }
 0x13d   :  { %v814_v3 = vmul.f32 0.1, %v782_v60  ;;  %v2917_v4 = vadd.f32 %v2916_v63, %v2915_v61  ;;  %v2918_v5 = vpop.f32.mrb[18].mxu0  ;;  %3161 = vmatprep.subr.bf16.mxu1 %v3446_v55  ;;  %v869_v10 = vmax.f32 %v805_v56, %v837_v0  ;;  %v845_v12 = vmax.f32 %v781_v25, %v813_v59 }
 0x13e   :  { %v2919_v9 = vpop.f32.mrb[19].mxu0  ;;  %v838_v34 = vmul.f32 0.1, %v806_v1 }
 0x13f   :  { %v674_v8 = vadd.f32 %v2917_v4, %v327_v29  ;;  %v2920_v11 = vadd.f32 %v2919_v9, %v2918_v5  ;;  %v846_v13 = vmax.f32 %v782_v60, %v814_v3  ;;  %v332_v60 = vmul.f32 %v3861_v50, %v3831_v37 }
 0x140   :  { %v870_v14 = vmax.f32 %v806_v1, %v838_v34  ;;  %3162 = vmatpush3.bf16.msra.mxu1 %v3446_v55 }
 0x141   :  { %v783_v32 = vadd.f32 %v3869_v62, %v674_v8  ;;  %v677_v15 = vadd.f32 %v2920_v11, %v328_v27  ;;  %v874_v16 = vpack.c.bf16 %v846_v13, %v845_v12  ;;  %3163 = vmatprep.subr.bf16.mxu1 %v3447_v6  ;;  %v334_v12 = vmul.f32 %v3861_v50, %v3835_v39 }
 0x142   :  { %v3916_v33 = vpack.c.bf16 %v870_v14, %v869_v10  ;;  %v333_v10 = vmul.f32 %v3861_v50, %v3837_v40 }
 0x143   :  { %v815_v18 = vmul.f32 0.1, %v783_v32  ;;  %v784_v19 = vadd.f32 %v3869_v62, %v677_v15  ;;  %v2921_v20 = vpop.f32.mrb[20].mxu0  ;;  %3128 = vmatmul.mubr.bf16.gmra.mrb[20].mxu1 %v874_v16 }
 0x144   :  { %v2922_v21 = vpop.f32.mrb[21].mxu0  ;;  %3164 = vmatpush3.bf16.msra.mxu1 %v3447_v6 }
 0x145   :  { %v816_v22 = vmul.f32 0.1, %v784_v19  ;;  %v2923_v23 = vadd.f32 %v2922_v21, %v2921_v20  ;;  %v2924_v24 = vpop.f32.mrb[22].mxu0  ;;  %v847_v51 = vmax.f32 %v783_v32, %v815_v18 }
 0x146   :  { %v2925_v26 = vpop.f32.mrb[23].mxu0 }
 0x147   :  { %v682_v47 = vadd.f32 %v2923_v23, %v329_v17  ;;  %v2926_v28 = vadd.f32 %v2925_v26, %v2924_v24  ;;  %v848_v31 = vmax.f32 %v784_v19, %v816_v22  ;;  %v335_v22 = vmul.f32 %v3861_v50, %v3841_v42 }
 0x148   :  { %v336_v26 = vmul.f32 %v3861_v50, %v3839_v41 }
 0x149   :  { %v785_v36 = vadd.f32 %v3869_v62, %v682_v47  ;;  %v685_v52 = vadd.f32 %v2926_v28, %v330_v30  ;;  %v875_v25 = vpack.c.bf16 %v848_v31, %v847_v51 }
 0x14b   :  { %v817_v53 = vmul.f32 0.1, %v785_v36  ;;  %v786_v54 = vadd.f32 %v3869_v62, %v685_v52  ;;  %v2927_v55 = vpop.f32.mrb[24].mxu0  ;;  %3131 = vmatprep.mubr.bf16.mxu1 %v875_v25 }
 0x14c   :  { %v2928_v56 = vpop.f32.mrb[25].mxu0 }
 0x14d   :  { %v818_v57 = vmul.f32 0.1, %v786_v54  ;;  %v2929_v29 = vadd.f32 %v2928_v56, %v2927_v55  ;;  %v2930_v59 = vpop.f32.mrb[26].mxu0  ;;  %v849_v1 = vmax.f32 %v785_v36, %v817_v53 }
 0x14e   :  { %v2931_v61 = vpop.f32.mrb[27].mxu0 }
 0x14f   :  { %v690_v63 = vadd.f32 %v2929_v29, %v331_v35  ;;  %v2932_v0 = vadd.f32 %v2931_v61, %v2930_v59  ;;  %v850_v27 = vmax.f32 %v786_v54, %v818_v57  ;;  %v337_v35 = vmul.f32 %v3861_v50, %v3845_v44 }
 0x150   :  { %v338_v59 = vmul.f32 %v3861_v50, %v3843_v43 }
 0x151   :  { %v787_v3 = vadd.f32 %v3869_v62, %v690_v63  ;;  %v693_v4 = vadd.f32 %v2932_v0, %v332_v60  ;;  %v876_v5 = vpack.c.bf16 %v850_v27, %v849_v1 }
 0x153   :  { %v819_v6 = vmul.f32 0.1, %v787_v3  ;;  %v788_v9 = vadd.f32 %v3869_v62, %v693_v4  ;;  %v2933_v34 = vpop.f32.mrb[28].mxu0  ;;  %3132 = vmatmul.mubr.bf16.gmra.mrb[24].mxu1 %v876_v5 }
 0x154   :  { %v2934_v38 = vpop.f32.mrb[29].mxu0 }
 0x155   :  { %v820_v8 = vmul.f32 0.1, %v788_v9  ;;  %v2935_v37 = vadd.f32 %v2934_v38, %v2933_v34  ;;  %v2936_v11 = vpop.f32.mrb[30].mxu0  ;;  %v851_v15 = vmax.f32 %v787_v3, %v819_v6  ;;  %v339_v34 = vmul.f32 %v3861_v50, %v3849_v46 }
 0x156   :  { %v2937_v13 = vpop.f32.mrb[31].mxu0 }
 0x157   :  { %v698_v14 = vadd.f32 %v2935_v37, %v333_v10  ;;  %v2938_v32 = vadd.f32 %v2937_v13, %v2936_v11  ;;  %v852_v16 = vmax.f32 %v788_v9, %v820_v8  ;;  %v340_v8 = vmul.f32 %v3861_v50, %v3847_v45 }
 0x159   :  { %v789_v17 = vadd.f32 %v3869_v62, %v698_v14  ;;  %v701_v18 = vadd.f32 %v2938_v32, %v334_v12  ;;  %v877_v19 = vpack.c.bf16 %v852_v16, %v851_v15 }
 0x15b   :  { %v821_v20 = vmul.f32 0.1, %v789_v17  ;;  %v790_v21 = vadd.f32 %v3869_v62, %v701_v18  ;;  %v2939_v30 = vpop.f32.mrb[32].mxu0  ;;  %3135 = vmatprep.mubr.bf16.mxu1 %v877_v19 }
 0x15c   :  { %v2940_v40 = vpop.f32.mrb[33].mxu0 }
 0x15d   :  { %v822_v23 = vmul.f32 0.1, %v790_v21  ;;  %v2941_v39 = vadd.f32 %v2940_v40, %v2939_v30  ;;  %v2942_v24 = vpop.f32.mrb[34].mxu0  ;;  %v853_v31 = vmax.f32 %v789_v17, %v821_v20  ;;  %v341_v20 = vmul.f32 %v3861_v50, %v3855_v49 }
 0x15e   :  { %v2943_v47 = vpop.f32.mrb[35].mxu0  ;;  %v342_v40 = vmul.f32 %v3861_v50, %v3853_v48  ;;  %v3448_v48 = vld [vmem:[#allocation5 + $0x68] sm:$0xff]   ;;  %v3449_v50 = vld [vmem:[#allocation5 + $0x70] sm:$0xff]  }
 0x15f   :  { %v706_v28 = vadd.f32 %v2941_v39, %v335_v22  ;;  %v2944_v51 = vadd.f32 %v2943_v47, %v2942_v24  ;;  %v854_v36 = vmax.f32 %v790_v21, %v822_v23  ;;  %3165 = vmatprep.subr.bf16.mxu1 %v3448_v48 }
 0x160   :  { %3166 = vmatpush3.bf16.msra.mxu1 %v3448_v48 }
 0x161   :  { %v791_v52 = vadd.f32 %v3869_v62, %v706_v28  ;;  %v709_v25 = vadd.f32 %v2944_v51, %v336_v26  ;;  %v878_v53 = vpack.c.bf16 %v854_v36, %v853_v31  ;;  %3167 = vmatprep.subr.bf16.mxu1 %v3449_v50 }
 0x163   :  { %v823_v54 = vmul.f32 0.1, %v791_v52  ;;  %v792_v55 = vadd.f32 %v3869_v62, %v709_v25  ;;  %v2945_v56 = vpop.f32.mrb[36].mxu0  ;;  %3136 = vmatmul.mubr.bf16.gmra.mrb[28].mxu1 %v878_v53 }
 0x164   :  { %v2946_v42 = vpop.f32.mrb[37].mxu0  ;;  %3168 = vmatpush3.bf16.msra.mxu1 %v3449_v50 }
 0x165   :  { %v824_v57 = vmul.f32 0.1, %v792_v55  ;;  %v2947_v41 = vadd.f32 %v2946_v42, %v2945_v56  ;;  %v2948_v29 = vpop.f32.mrb[38].mxu0  ;;  %v855_v0 = vmax.f32 %v791_v52, %v823_v54  ;;  %v3450_v54 = vld [vmem:[#allocation5 + $0x78] sm:$0xff]  }
 0x166   :  { %v2949_v60 = vpop.f32.mrb[39].mxu0  ;;  %3169 = vmatprep.subr.bf16.mxu1 %v3450_v54  ;;  %v3454_v56 = vld [vmem:[#allocation5 + $0x98] sm:$0xff]  }
 0x167   :  { %v714_v61 = vadd.f32 %v2947_v41, %v337_v35  ;;  %v2950_v63 = vadd.f32 %v2949_v60, %v2948_v29  ;;  %v856_v1 = vmax.f32 %v792_v55, %v824_v57  ;;  %v3452_v55 = vld [vmem:[#allocation5 + $0x88] sm:$0xff]  }
 0x168   :  { %3170 = vmatpush3.bf16.msra.mxu1 %v3450_v54 }
 0x169   :  { %v793_v27 = vadd.f32 %v3869_v62, %v714_v61  ;;  %v717_v3 = vadd.f32 %v2950_v63, %v338_v59  ;;  %v879_v4 = vpack.c.bf16 %v856_v1, %v855_v0 }
 0x16b   :  { %v825_v5 = vmul.f32 0.1, %v793_v27  ;;  %v794_v6 = vadd.f32 %v3869_v62, %v717_v3  ;;  %v2951_v9 = vpop.f32.mrb[40].mxu0  ;;  %3139 = vmatprep.mubr.bf16.mxu1 %v879_v4 }
 0x16c   :  { %v2952_v44 = vpop.f32.mrb[41].mxu0 }
 0x16d   :  { %v826_v38 = vmul.f32 0.1, %v794_v6  ;;  %v2953_v43 = vadd.f32 %v2952_v44, %v2951_v9  ;;  %v2954_v10 = vpop.f32.mrb[42].mxu0  ;;  %v857_v13 = vmax.f32 %v793_v27, %v825_v5 }
 0x16e   :  { %v2955_v37 = vpop.f32.mrb[43].mxu0 }
 0x16f   :  { %v722_v11 = vadd.f32 %v2953_v43, %v339_v34  ;;  %v2956_v12 = vadd.f32 %v2955_v37, %v2954_v10  ;;  %v858_v14 = vmax.f32 %v794_v6, %v826_v38 }
 0x171   :  { %v795_v32 = vadd.f32 %v3869_v62, %v722_v11  ;;  %v725_v15 = vadd.f32 %v2956_v12, %v340_v8  ;;  %v880_v16 = vpack.c.bf16 %v858_v14, %v857_v13 }
 0x173   :  { %v827_v17 = vmul.f32 0.1, %v795_v32  ;;  %v796_v18 = vadd.f32 %v3869_v62, %v725_v15  ;;  %v2957_v19 = vpop.f32.mrb[44].mxu0  ;;  %3140 = vmatmul.mubr.bf16.gmra.mrb[32].mxu1 %v880_v16 }
 0x174   :  { %v2958_v46 = vpop.f32.mrb[45].mxu0 }
 0x175   :  { %v828_v21 = vmul.f32 0.1, %v796_v18  ;;  %v2959_v45 = vadd.f32 %v2958_v46, %v2957_v19  ;;  %v2960_v30 = vpop.f32.mrb[46].mxu0  ;;  %v859_v24 = vmax.f32 %v795_v32, %v827_v17 }
 0x176   :  { %v2961_v22 = vpop.f32.mrb[47].mxu0 }
 0x177   :  { %v730_v23 = vadd.f32 %v2959_v45, %v341_v20  ;;  %v2962_v39 = vadd.f32 %v2961_v22, %v2960_v30  ;;  %v860_v26 = vmax.f32 %v796_v18, %v828_v21 }
 0x179   :  { %v797_v47 = vadd.f32 %v3869_v62, %v730_v23  ;;  %v733_v28 = vadd.f32 %v2962_v39, %v342_v40  ;;  %v881_v51 = vpack.c.bf16 %v860_v26, %v859_v24 }
 0x17b   :  { %v829_v31 = vmul.f32 0.1, %v797_v47  ;;  %v798_v36 = vadd.f32 %v3869_v62, %v733_v28  ;;  %3143 = vmatprep.mubr.bf16.mxu1 %v881_v51  ;;  %v3451_v62 = vld [vmem:[#allocation5 + $0x80] sm:$0xff]  }
 0x17c   :  { %3203 = vmatprep.subr.bf16.mxu0 %v3451_v62 }
 0x17d   :  { %v830_v49 = vmul.f32 0.1, %v798_v36  ;;  %v861_v52 = vmax.f32 %v797_v47, %v829_v31  ;;  %3204 = vmatpush3.bf16.msra.mxu0 %v3451_v62 }
 0x17e   :  { %3205 = vmatprep.subr.bf16.mxu0 %v3452_v55 }
 0x17f   :  { %v862_v25 = vmax.f32 %v798_v36, %v830_v49 }
 0x181   :  { %v882_v53 = vpack.c.bf16 %v862_v25, %v861_v52  ;;  %3206 = vmatpush3.bf16.msra.mxu0 %v3452_v55 }
 0x183   :  { %3144 = vmatmul.mubr.bf16.gmra.mrb[36].mxu1 %v882_v53 }
 0x184   :  { %3147 = vmatprep.mubr.bf16.mxu1 %v3882_v7  ;;  %v3453_v7 = vld [vmem:[#allocation5 + $0x90] sm:$0xff]  }
 0x185   :  { %3207 = vmatprep.subr.bf16.mxu0 %v3453_v7 }
 0x186   :  { %3208 = vmatpush3.bf16.msra.mxu0 %v3453_v7 }
 0x187   :  { %3209 = vmatprep.subr.bf16.mxu0 %v3454_v56 }
 0x18a   :  { %3210 = vmatpush3.bf16.msra.mxu0 %v3454_v56 }
 0x18b   :  { %3148 = vmatmul.mubr.bf16.gmra.mrb[40].mxu1 %v3894_v2  ;;  %v3455_v2 = vld [vmem:[#allocation5 + $0xa0] sm:$0xff]  }
 0x18c   :  { %3151 = vmatprep.mubr.bf16.mxu1 %v3907_v58  ;;  %3211 = vmatprep.subr.bf16.mxu0 %v3455_v2  ;;  %v3968_v58 = vld [vmem:[%s4171_s6] ss:$0 sm:$0xff] }
 0x18e   :  { %3212 = vmatpush3.bf16.msra.mxu0 %v3455_v2 }
 0x193   :  { %3152 = vmatmul.mubr.bf16.gmra.mrb[44].mxu1 %v3916_v33 }
 0x206   :  { %v3125_v33 = vpop.f32.mrb[16].mxu1 }
 0x207   :  { %v1001_v42 = vadd.f32 %v3125_v33, %v3968_v58  ;;  %v992_v35 = vpop.f32.mrb[17].mxu1 }
 0x208   :  { %v993_v57 = vadd.f32 %v3968_v58, %v992_v35  ;;  %v3126_v41 = vpop.f32.mrb[18].mxu1 }
 0x209   :  { %v1121_v29 = vmul.f32 0.1, %v1001_v42  ;;  %v1004_v59 = vadd.f32 %v3126_v41, %v3968_v58  ;;  %v995_v60 = vpop.f32.mrb[19].mxu1 }
 0x20a   :  { %v1119_v61 = vmul.f32 0.1, %v993_v57  ;;  %v996_v63 = vadd.f32 %v3968_v58, %v995_v60 }
 0x20b   :  { %v1122_v0 = vmul.f32 0.1, %v1004_v59  ;;  %v1153_v27 = vmax.f32 %v1001_v42, %v1121_v29 }
 0x20c   :  { %v1120_v1 = vmul.f32 0.1, %v996_v63  ;;  %v1151_v4 = vmax.f32 %v993_v57, %v1119_v61 }
 0x20d   :  { %v1154_v3 = vmax.f32 %v1004_v59, %v1122_v0 }
 0x20e   :  { %v1152_v5 = vmax.f32 %v996_v63, %v1120_v1 }
 0x20f   :  { %v1184_v6 = vpack.c.bf16 %v1154_v3, %v1153_v27 }
 0x210   :  { %v1183_v9 = vpack.c.bf16 %v1152_v5, %v1151_v4 }
 0x212   :  { %3171 = vmatprep.mubr.bf16.mxu1 %v1183_v9 }
 0x213   :  { %3172 = vmatmul.mubr.bf16.vlgmr.msra.gmra.mrb[48].mxu1 %v1184_v6 }
 0x216   :  { %v3129_v44 = vpop.f32.mrb[20].mxu1 }
 0x217   :  { %v1017_v34 = vadd.f32 %v3129_v44, %v3968_v58  ;;  %v1008_v38 = vpop.f32.mrb[21].mxu1 }
 0x218   :  { %v1009_v43 = vadd.f32 %v3968_v58, %v1008_v38  ;;  %v3130_v10 = vpop.f32.mrb[22].mxu1 }
 0x219   :  { %v1125_v8 = vmul.f32 0.1, %v1017_v34  ;;  %v1020_v37 = vadd.f32 %v3130_v10, %v3968_v58  ;;  %v1011_v11 = vpop.f32.mrb[23].mxu1 }
 0x21a   :  { %v1123_v12 = vmul.f32 0.1, %v1009_v43  ;;  %v1012_v13 = vadd.f32 %v3968_v58, %v1011_v11 }
 0x21b   :  { %v1126_v14 = vmul.f32 0.1, %v1020_v37  ;;  %v1157_v15 = vmax.f32 %v1017_v34, %v1125_v8 }
 0x21c   :  { %v1124_v32 = vmul.f32 0.1, %v1012_v13  ;;  %v1155_v17 = vmax.f32 %v1009_v43, %v1123_v12 }
 0x21d   :  { %v1158_v16 = vmax.f32 %v1020_v37, %v1126_v14 }
 0x21e   :  { %v1156_v18 = vmax.f32 %v1012_v13, %v1124_v32 }
 0x21f   :  { %v1186_v19 = vpack.c.bf16 %v1158_v16, %v1157_v15 }
 0x220   :  { %v1185_v46 = vpack.c.bf16 %v1156_v18, %v1155_v17 }
 0x222   :  { %3175 = vmatprep.mubr.bf16.mxu1 %v1185_v46 }
 0x223   :  { %3176 = vmatmul.mubr.bf16.gmra.mrb[52].mxu1 %v1186_v19 }
 0x226   :  { %v3133_v20 = vpop.f32.mrb[24].mxu1 }
 0x227   :  { %v1033_v21 = vadd.f32 %v3133_v20, %v3968_v58  ;;  %v1024_v45 = vpop.f32.mrb[25].mxu1 }
 0x228   :  { %v1025_v30 = vadd.f32 %v3968_v58, %v1024_v45  ;;  %v3134_v40 = vpop.f32.mrb[26].mxu1 }
 0x229   :  { %v1129_v22 = vmul.f32 0.1, %v1033_v21  ;;  %v1036_v23 = vadd.f32 %v3134_v40, %v3968_v58  ;;  %v1027_v39 = vpop.f32.mrb[27].mxu1 }
 0x22a   :  { %v1127_v24 = vmul.f32 0.1, %v1025_v30  ;;  %v1028_v26 = vadd.f32 %v3968_v58, %v1027_v39 }
 0x22b   :  { %v1130_v47 = vmul.f32 0.1, %v1036_v23  ;;  %v1161_v51 = vmax.f32 %v1033_v21, %v1129_v22 }
 0x22c   :  { %v1128_v28 = vmul.f32 0.1, %v1028_v26  ;;  %v1159_v36 = vmax.f32 %v1025_v30, %v1127_v24 }
 0x22d   :  { %v1162_v31 = vmax.f32 %v1036_v23, %v1130_v47 }
 0x22e   :  { %v1160_v49 = vmax.f32 %v1028_v26, %v1128_v28 }
 0x22f   :  { %v1188_v52 = vpack.c.bf16 %v1162_v31, %v1161_v51 }
 0x230   :  { %v1187_v25 = vpack.c.bf16 %v1160_v49, %v1159_v36 }
 0x232   :  { %3179 = vmatprep.mubr.bf16.mxu1 %v1187_v25 }
 0x233   :  { %3180 = vmatmul.mubr.bf16.gmra.mrb[56].mxu1 %v1188_v52 }
 0x236   :  { %v3137_v53 = vpop.f32.mrb[28].mxu1 }
 0x237   :  { %v1049_v48 = vadd.f32 %v3137_v53, %v3968_v58  ;;  %v1040_v50 = vpop.f32.mrb[29].mxu1 }
 0x238   :  { %v1041_v54 = vadd.f32 %v3968_v58, %v1040_v50  ;;  %v3138_v62 = vpop.f32.mrb[30].mxu1 }
 0x239   :  { %v1133_v55 = vmul.f32 0.1, %v1049_v48  ;;  %v1052_v7 = vadd.f32 %v3138_v62, %v3968_v58  ;;  %v1043_v56 = vpop.f32.mrb[31].mxu1 }
 0x23a   :  { %v1131_v2 = vmul.f32 0.1, %v1041_v54  ;;  %v1044_v33 = vadd.f32 %v3968_v58, %v1043_v56 }
 0x23b   :  { %v1134_v42 = vmul.f32 0.1, %v1052_v7  ;;  %v1165_v57 = vmax.f32 %v1049_v48, %v1133_v55  ;;  %v3456_v55 = vld [vmem:[#allocation5 + $0xa8] sm:$0xff]  }
 0x23c   :  { %v1132_v35 = vmul.f32 0.1, %v1044_v33  ;;  %v1163_v29 = vmax.f32 %v1041_v54, %v1131_v2  ;;  %3213 = vmatprep.subr.bf16.mxu0 %v3456_v55 }
 0x23d   :  { %v1166_v41 = vmax.f32 %v1052_v7, %v1134_v42  ;;  %3214 = vmatpush3.bf16.msra.mxu0 %v3456_v55 }
 0x23e   :  { %v1164_v59 = vmax.f32 %v1044_v33, %v1132_v35 }
 0x23f   :  { %v1190_v60 = vpack.c.bf16 %v1166_v41, %v1165_v57 }
 0x240   :  { %v1189_v61 = vpack.c.bf16 %v1164_v59, %v1163_v29 }
 0x242   :  { %3183 = vmatprep.mubr.bf16.mxu1 %v1189_v61 }
 0x243   :  { %3184 = vmatmul.mubr.bf16.gmra.mrb[60].mxu1 %v1190_v60 }
 0x246   :  { %v3141_v63 = vpop.f32.mrb[32].mxu1 }
 0x247   :  { %v1065_v0 = vadd.f32 %v3141_v63, %v3968_v58  ;;  %v1056_v1 = vpop.f32.mrb[33].mxu1  ;;  %v3457_v63 = vld [vmem:[#allocation5 + $0xb0] sm:$0xff]  }
 0x248   :  { %v1057_v27 = vadd.f32 %v3968_v58, %v1056_v1  ;;  %v3142_v3 = vpop.f32.mrb[34].mxu1  ;;  %3215 = vmatprep.subr.bf16.mxu0 %v3457_v63 }
 0x249   :  { %v1137_v4 = vmul.f32 0.1, %v1065_v0  ;;  %v1068_v5 = vadd.f32 %v3142_v3, %v3968_v58  ;;  %v1059_v6 = vpop.f32.mrb[35].mxu1  ;;  %3216 = vmatpush3.bf16.msra.mxu0 %v3457_v63 }
 0x24a   :  { %v1135_v9 = vmul.f32 0.1, %v1057_v27  ;;  %v1060_v44 = vadd.f32 %v3968_v58, %v1059_v6  ;;  %v3458_v6 = vld [vmem:[#allocation5 + $0xb8] sm:$0xff]  }
 0x24b   :  { %v1138_v34 = vmul.f32 0.1, %v1068_v5  ;;  %v1169_v43 = vmax.f32 %v1065_v0, %v1137_v4  ;;  %3217 = vmatprep.subr.bf16.mxu0 %v3458_v6 }
 0x24c   :  { %v1136_v38 = vmul.f32 0.1, %v1060_v44  ;;  %v1167_v8 = vmax.f32 %v1057_v27, %v1135_v9 }
 0x24d   :  { %v1170_v10 = vmax.f32 %v1068_v5, %v1138_v34  ;;  %3218 = vmatpush3.bf16.msra.mxu0 %v3458_v6 }
 0x24e   :  { %v1168_v37 = vmax.f32 %v1060_v44, %v1136_v38 }
 0x24f   :  { %v1192_v11 = vpack.c.bf16 %v1170_v10, %v1169_v43  ;;  %v3459_v43 = vld [vmem:[#allocation5 + $0xc0] sm:$0xff]   ;;  %v3460_v10 = vld [vmem:[#allocation5 + $0xc8] sm:$0xff]  }
 0x250   :  { %v1191_v12 = vpack.c.bf16 %v1168_v37, %v1167_v8  ;;  %3251 = vmatprep.subr.bf16.mxu1 %v3459_v43  ;;  %v3462_v8 = vld [vmem:[#allocation5 + $0xd8] sm:$0xff]   ;;  %v3463_v37 = vld [vmem:[#allocation5 + $0xe0] sm:$0xff]  }
 0x251   :  { %3252 = vmatpush3.bf16.msra.mxu1 %v3459_v43 }
 0x252   :  { %3187 = vmatprep.mubr.bf16.mxu1 %v1191_v12  ;;  %3253 = vmatprep.subr.bf16.mxu1 %v3460_v10 }
 0x253   :  { %3188 = vmatmul.mubr.bf16.gmra.mrb[64].mxu1 %v1192_v11  ;;  %v4005_v11 = vld [vmem:[%s4171_s6 + $0x1] ss:$0 sm:$0xff] }
 0x255   :  { %3254 = vmatpush3.bf16.msra.mxu1 %v3460_v10 }
 0x256   :  { %v3145_v13 = vpop.f32.mrb[36].mxu1 }
 0x257   :  { %v1081_v14 = vadd.f32 %v3145_v13, %v3968_v58  ;;  %v1072_v32 = vpop.f32.mrb[37].mxu1 }
 0x258   :  { %v1073_v15 = vadd.f32 %v3968_v58, %v1072_v32  ;;  %v3146_v16 = vpop.f32.mrb[38].mxu1 }
 0x259   :  { %v1141_v17 = vmul.f32 0.1, %v1081_v14  ;;  %v1084_v18 = vadd.f32 %v3146_v16, %v3968_v58  ;;  %v1075_v19 = vpop.f32.mrb[39].mxu1 }
 0x25a   :  { %v1139_v46 = vmul.f32 0.1, %v1073_v15  ;;  %v1076_v20 = vadd.f32 %v3968_v58, %v1075_v19 }
 0x25b   :  { %v1142_v21 = vmul.f32 0.1, %v1084_v18  ;;  %v1173_v30 = vmax.f32 %v1081_v14, %v1141_v17 }
 0x25c   :  { %v1140_v45 = vmul.f32 0.1, %v1076_v20  ;;  %v1171_v22 = vmax.f32 %v1073_v15, %v1139_v46 }
 0x25d   :  { %v1174_v40 = vmax.f32 %v1084_v18, %v1142_v21 }
 0x25e   :  { %v1172_v23 = vmax.f32 %v1076_v20, %v1140_v45  ;;  %v3149_v39 = vpop.f32.mrb[40].mxu1 }
 0x25f   :  { %v1097_v24 = vadd.f32 %v3149_v39, %v3968_v58  ;;  %v1088_v26 = vpop.f32.mrb[41].mxu1  ;;  %v1194_v47 = vpack.c.bf16 %v1174_v40, %v1173_v30 }
 0x260   :  { %v1089_v28 = vadd.f32 %v3968_v58, %v1088_v26  ;;  %v3150_v51 = vpop.f32.mrb[42].mxu1  ;;  %v1193_v31 = vpack.c.bf16 %v1172_v23, %v1171_v22 }
 0x261   :  { %v1145_v36 = vmul.f32 0.1, %v1097_v24  ;;  %v1100_v49 = vadd.f32 %v3150_v51, %v3968_v58  ;;  %v1091_v52 = vpop.f32.mrb[43].mxu1 }
 0x262   :  { %v1143_v25 = vmul.f32 0.1, %v1089_v28  ;;  %v1092_v53 = vadd.f32 %v3968_v58, %v1091_v52  ;;  %3191 = vmatprep.mubr.bf16.mxu1 %v1193_v31 }
 0x263   :  { %v1146_v48 = vmul.f32 0.1, %v1100_v49  ;;  %3192 = vmatmul.mubr.bf16.gmra.mrb[68].mxu1 %v1194_v47  ;;  %v1177_v54 = vmax.f32 %v1097_v24, %v1145_v36 }
 0x264   :  { %v1144_v50 = vmul.f32 0.1, %v1092_v53  ;;  %v1175_v7 = vmax.f32 %v1089_v28, %v1143_v25 }
 0x265   :  { %v1178_v62 = vmax.f32 %v1100_v49, %v1146_v48 }
 0x266   :  { %v1176_v56 = vmax.f32 %v1092_v53, %v1144_v50  ;;  %v3153_v2 = vpop.f32.mrb[44].mxu1 }
 0x267   :  { %v1113_v33 = vadd.f32 %v3153_v2, %v3968_v58  ;;  %v1104_v42 = vpop.f32.mrb[45].mxu1  ;;  %v1196_v35 = vpack.c.bf16 %v1178_v62, %v1177_v54 }
 0x268   :  { %v1105_v57 = vadd.f32 %v3968_v58, %v1104_v42  ;;  %v3154_v41 = vpop.f32.mrb[46].mxu1  ;;  %v1195_v29 = vpack.c.bf16 %v1176_v56, %v1175_v7 }
 0x269   :  { %v1149_v59 = vmul.f32 0.1, %v1113_v33  ;;  %v1116_v60 = vadd.f32 %v3154_v41, %v3968_v58  ;;  %v1107_v61 = vpop.f32.mrb[47].mxu1 }
 0x26a   :  { %v1147_v0 = vmul.f32 0.1, %v1105_v57  ;;  %v1108_v1 = vadd.f32 %v3968_v58, %v1107_v61  ;;  %3195 = vmatprep.mubr.bf16.mxu1 %v1195_v29  ;;  %v3461_v58 = vld [vmem:[#allocation5 + $0xd0] sm:$0xff]  }
 0x26b   :  { %v1150_v27 = vmul.f32 0.1, %v1116_v60  ;;  %3196 = vmatmul.mubr.bf16.gmra.mrb[72].mxu1 %v1196_v35  ;;  %v1181_v4 = vmax.f32 %v1113_v33, %v1149_v59  ;;  %3255 = vmatprep.subr.bf16.mxu1 %v3461_v58 }
 0x26c   :  { %v1148_v3 = vmul.f32 0.1, %v1108_v1  ;;  %v1179_v9 = vmax.f32 %v1105_v57, %v1147_v0  ;;  %3256 = vmatpush3.bf16.msra.mxu1 %v3461_v58 }
 0x26d   :  { %v1182_v5 = vmax.f32 %v1116_v60, %v1150_v27  ;;  %3257 = vmatprep.subr.bf16.mxu1 %v3462_v8 }
 0x26e   :  { %v1180_v44 = vmax.f32 %v1108_v1, %v1148_v3 }
 0x26f   :  { %v1198_v34 = vpack.c.bf16 %v1182_v5, %v1181_v4 }
 0x270   :  { %v1197_v38 = vpack.c.bf16 %v1180_v44, %v1179_v9  ;;  %3258 = vmatpush3.bf16.msra.mxu1 %v3462_v8 }
 0x271   :  { %3259 = vmatprep.subr.bf16.mxu1 %v3463_v37 }
 0x272   :  { %3199 = vmatprep.mubr.bf16.mxu1 %v1197_v38 }
 0x273   :  { %3200 = vmatmul.mubr.bf16.gmra.mrb[76].mxu1 %v1198_v34 }
 0x274   :  { %3260 = vmatpush3.bf16.msra.mxu1 %v3463_v37 }
 0x2e6   :  { %v3173_v12 = vpop.f32.mrb[48].mxu1 }
 0x2e7   :  { %v1315_v13 = vadd.f32 %v3173_v12, %v4005_v11  ;;  %v1306_v14 = vpop.f32.mrb[49].mxu1 }
 0x2e8   :  { %v1307_v32 = vadd.f32 %v4005_v11, %v1306_v14  ;;  %v3174_v15 = vpop.f32.mrb[50].mxu1 }
 0x2e9   :  { %v1435_v16 = vmul.f32 0.1, %v1315_v13  ;;  %v1318_v17 = vadd.f32 %v3174_v15, %v4005_v11  ;;  %v1309_v18 = vpop.f32.mrb[51].mxu1 }
 0x2ea   :  { %v1433_v19 = vmul.f32 0.1, %v1307_v32  ;;  %v1310_v46 = vadd.f32 %v4005_v11, %v1309_v18 }
 0x2eb   :  { %v1436_v20 = vmul.f32 0.1, %v1318_v17  ;;  %v1467_v45 = vmax.f32 %v1315_v13, %v1435_v16 }
 0x2ec   :  { %v1434_v21 = vmul.f32 0.1, %v1310_v46  ;;  %v1465_v40 = vmax.f32 %v1307_v32, %v1433_v19 }
 0x2ed   :  { %v1468_v30 = vmax.f32 %v1318_v17, %v1436_v20 }
 0x2ee   :  { %v1466_v22 = vmax.f32 %v1310_v46, %v1434_v21 }
 0x2ef   :  { %v1498_v23 = vpack.c.bf16 %v1468_v30, %v1467_v45 }
 0x2f0   :  { %v1497_v39 = vpack.c.bf16 %v1466_v22, %v1465_v40 }
 0x2f2   :  { %3219 = vmatprep.mubr.bf16.mxu0 %v1497_v39 }
 0x2f3   :  { %3220 = vmatmul.mubr.bf16.vlgmr.msra.gmra.mrb[48].mxu0 %v1498_v23 }
 0x2f6   :  { %v3177_v24 = vpop.f32.mrb[52].mxu1 }
 0x2f7   :  { %v1331_v26 = vadd.f32 %v3177_v24, %v4005_v11  ;;  %v1322_v47 = vpop.f32.mrb[53].mxu1 }
 0x2f8   :  { %v1323_v28 = vadd.f32 %v4005_v11, %v1322_v47  ;;  %v3178_v51 = vpop.f32.mrb[54].mxu1 }
 0x2f9   :  { %v1439_v31 = vmul.f32 0.1, %v1331_v26  ;;  %v1334_v36 = vadd.f32 %v3178_v51, %v4005_v11  ;;  %v1325_v49 = vpop.f32.mrb[55].mxu1 }
 0x2fa   :  { %v1437_v52 = vmul.f32 0.1, %v1323_v28  ;;  %v1326_v25 = vadd.f32 %v4005_v11, %v1325_v49 }
 0x2fb   :  { %v1440_v53 = vmul.f32 0.1, %v1334_v36  ;;  %v1471_v50 = vmax.f32 %v1331_v26, %v1439_v31 }
 0x2fc   :  { %v1438_v48 = vmul.f32 0.1, %v1326_v25  ;;  %v1469_v62 = vmax.f32 %v1323_v28, %v1437_v52 }
 0x2fd   :  { %v1472_v54 = vmax.f32 %v1334_v36, %v1440_v53 }
 0x2fe   :  { %v1470_v55 = vmax.f32 %v1326_v25, %v1438_v48 }
 0x2ff   :  { %v1500_v7 = vpack.c.bf16 %v1472_v54, %v1471_v50 }
 0x300   :  { %v1499_v56 = vpack.c.bf16 %v1470_v55, %v1469_v62 }
 0x302   :  { %3223 = vmatprep.mubr.bf16.mxu0 %v1499_v56 }
 0x303   :  { %3224 = vmatmul.mubr.bf16.gmra.mrb[52].mxu0 %v1500_v7 }
 0x306   :  { %v3181_v2 = vpop.f32.mrb[56].mxu1 }
 0x307   :  { %v1347_v33 = vadd.f32 %v3181_v2, %v4005_v11  ;;  %v1338_v42 = vpop.f32.mrb[57].mxu1 }
 0x308   :  { %v1339_v35 = vadd.f32 %v4005_v11, %v1338_v42  ;;  %v3182_v57 = vpop.f32.mrb[58].mxu1 }
 0x309   :  { %v1443_v41 = vmul.f32 0.1, %v1347_v33  ;;  %v1350_v29 = vadd.f32 %v3182_v57, %v4005_v11  ;;  %v1341_v59 = vpop.f32.mrb[59].mxu1 }
 0x30a   :  { %v1441_v60 = vmul.f32 0.1, %v1339_v35  ;;  %v1342_v61 = vadd.f32 %v4005_v11, %v1341_v59 }
 0x30b   :  { %v1444_v63 = vmul.f32 0.1, %v1350_v29  ;;  %v1475_v1 = vmax.f32 %v1347_v33, %v1443_v41 }
 0x30c   :  { %v1442_v0 = vmul.f32 0.1, %v1342_v61  ;;  %v1473_v3 = vmax.f32 %v1339_v35, %v1441_v60 }
 0x30d   :  { %v1476_v27 = vmax.f32 %v1350_v29, %v1444_v63 }
 0x30e   :  { %v1474_v4 = vmax.f32 %v1342_v61, %v1442_v0 }
 0x30f   :  { %v1502_v5 = vpack.c.bf16 %v1476_v27, %v1475_v1 }
 0x310   :  { %v1501_v6 = vpack.c.bf16 %v1474_v4, %v1473_v3 }
 0x312   :  { %3227 = vmatprep.mubr.bf16.mxu0 %v1501_v6 }
 0x313   :  { %3228 = vmatmul.mubr.bf16.gmra.mrb[56].mxu0 %v1502_v5 }
 0x316   :  { %v3185_v9 = vpop.f32.mrb[60].mxu1 }
 0x317   :  { %v1363_v44 = vadd.f32 %v3185_v9, %v4005_v11  ;;  %v1354_v34 = vpop.f32.mrb[61].mxu1 }
 0x318   :  { %v1355_v38 = vadd.f32 %v4005_v11, %v1354_v34  ;;  %v3186_v43 = vpop.f32.mrb[62].mxu1 }
 0x319   :  { %v1447_v10 = vmul.f32 0.1, %v1363_v44  ;;  %v1366_v58 = vadd.f32 %v3186_v43, %v4005_v11  ;;  %v1357_v8 = vpop.f32.mrb[63].mxu1 }
 0x31a   :  { %v1445_v37 = vmul.f32 0.1, %v1355_v38  ;;  %v1358_v12 = vadd.f32 %v4005_v11, %v1357_v8 }
 0x31b   :  { %v1448_v13 = vmul.f32 0.1, %v1366_v58  ;;  %v1479_v32 = vmax.f32 %v1363_v44, %v1447_v10  ;;  %v3464_v10 = vld [vmem:[#allocation5 + $0xe8] sm:$0xff]  }
 0x31c   :  { %v1446_v14 = vmul.f32 0.1, %v1358_v12  ;;  %v1477_v16 = vmax.f32 %v1355_v38, %v1445_v37  ;;  %3261 = vmatprep.subr.bf16.mxu1 %v3464_v10 }
 0x31d   :  { %v1480_v15 = vmax.f32 %v1366_v58, %v1448_v13  ;;  %3262 = vmatpush3.bf16.msra.mxu1 %v3464_v10 }
 0x31e   :  { %v1478_v17 = vmax.f32 %v1358_v12, %v1446_v14 }
 0x31f   :  { %v1504_v18 = vpack.c.bf16 %v1480_v15, %v1479_v32 }
 0x320   :  { %v1503_v19 = vpack.c.bf16 %v1478_v17, %v1477_v16 }
 0x322   :  { %3231 = vmatprep.mubr.bf16.mxu0 %v1503_v19 }
 0x323   :  { %3232 = vmatmul.mubr.bf16.gmra.mrb[60].mxu0 %v1504_v18 }
 0x326   :  { %v3189_v46 = vpop.f32.mrb[64].mxu1 }
 0x327   :  { %v1379_v20 = vadd.f32 %v3189_v46, %v4005_v11  ;;  %v1370_v21 = vpop.f32.mrb[65].mxu1  ;;  %v3465_v46 = vld [vmem:[#allocation5 + $0xf0] sm:$0xff]  }
 0x328   :  { %v1371_v45 = vadd.f32 %v4005_v11, %v1370_v21  ;;  %v3190_v30 = vpop.f32.mrb[66].mxu1  ;;  %3263 = vmatprep.subr.bf16.mxu1 %v3465_v46 }
 0x329   :  { %v1451_v40 = vmul.f32 0.1, %v1379_v20  ;;  %v1382_v22 = vadd.f32 %v3190_v30, %v4005_v11  ;;  %v1373_v23 = vpop.f32.mrb[67].mxu1  ;;  %3264 = vmatpush3.bf16.msra.mxu1 %v3465_v46 }
 0x32a   :  { %v1449_v39 = vmul.f32 0.1, %v1371_v45  ;;  %v1374_v24 = vadd.f32 %v4005_v11, %v1373_v23  ;;  %v3466_v23 = vld [vmem:[#allocation5 + $0xf8] sm:$0xff]  }
 0x32b   :  { %v1452_v26 = vmul.f32 0.1, %v1382_v22  ;;  %v1483_v28 = vmax.f32 %v1379_v20, %v1451_v40  ;;  %3265 = vmatprep.subr.bf16.mxu1 %v3466_v23 }
 0x32c   :  { %v1450_v47 = vmul.f32 0.1, %v1374_v24  ;;  %v1481_v31 = vmax.f32 %v1371_v45, %v1449_v39 }
 0x32d   :  { %v1484_v51 = vmax.f32 %v1382_v22, %v1452_v26  ;;  %3266 = vmatpush3.bf16.msra.mxu1 %v3466_v23 }
 0x32e   :  { %v1482_v36 = vmax.f32 %v1374_v24, %v1450_v47 }
 0x32f   :  { %v1506_v49 = vpack.c.bf16 %v1484_v51, %v1483_v28  ;;  %v3467_v28 = vld [vmem:[#allocation5 + $0x100] sm:$0xff]   ;;  %v3468_v51 = vld [vmem:[#allocation5 + $0x108] sm:$0xff]  }
 0x330   :  { %v1505_v52 = vpack.c.bf16 %v1482_v36, %v1481_v31  ;;  %3299 = vmatprep.subr.bf16.mxu0 %v3467_v28  ;;  %v3470_v31 = vld [vmem:[#allocation5 + $0x118] sm:$0xff]   ;;  %v3471_v36 = vld [vmem:[#allocation5 + $0x120] sm:$0xff]  }
 0x331   :  { %3300 = vmatpush3.bf16.msra.mxu0 %v3467_v28 }
 0x332   :  { %3235 = vmatprep.mubr.bf16.mxu0 %v1505_v52  ;;  %3301 = vmatprep.subr.bf16.mxu0 %v3468_v51 }
 0x333   :  { %3236 = vmatmul.mubr.bf16.gmra.mrb[64].mxu0 %v1506_v49  ;;  %v4042_v49 = vld [vmem:[%s4171_s6 + $0x2] ss:$0 sm:$0xff] }
 0x335   :  { %3302 = vmatpush3.bf16.msra.mxu0 %v3468_v51 }
 0x336   :  { %v3193_v25 = vpop.f32.mrb[68].mxu1 }
 0x337   :  { %v1395_v53 = vadd.f32 %v3193_v25, %v4005_v11  ;;  %v1386_v48 = vpop.f32.mrb[69].mxu1 }
 0x338   :  { %v1387_v50 = vadd.f32 %v4005_v11, %v1386_v48  ;;  %v3194_v54 = vpop.f32.mrb[70].mxu1 }
 0x339   :  { %v1455_v62 = vmul.f32 0.1, %v1395_v53  ;;  %v1398_v55 = vadd.f32 %v3194_v54, %v4005_v11  ;;  %v1389_v7 = vpop.f32.mrb[71].mxu1 }
 0x33a   :  { %v1453_v56 = vmul.f32 0.1, %v1387_v50  ;;  %v1390_v2 = vadd.f32 %v4005_v11, %v1389_v7 }
 0x33b   :  { %v1456_v33 = vmul.f32 0.1, %v1398_v55  ;;  %v1487_v35 = vmax.f32 %v1395_v53, %v1455_v62 }
 0x33c   :  { %v1454_v42 = vmul.f32 0.1, %v1390_v2  ;;  %v1485_v41 = vmax.f32 %v1387_v50, %v1453_v56 }
 0x33d   :  { %v1488_v57 = vmax.f32 %v1398_v55, %v1456_v33 }
 0x33e   :  { %v1486_v29 = vmax.f32 %v1390_v2, %v1454_v42  ;;  %v3197_v59 = vpop.f32.mrb[72].mxu1 }
 0x33f   :  { %v1411_v60 = vadd.f32 %v3197_v59, %v4005_v11  ;;  %v1402_v61 = vpop.f32.mrb[73].mxu1  ;;  %v1508_v63 = vpack.c.bf16 %v1488_v57, %v1487_v35 }
 0x340   :  { %v1403_v0 = vadd.f32 %v4005_v11, %v1402_v61  ;;  %v3198_v1 = vpop.f32.mrb[74].mxu1  ;;  %v1507_v27 = vpack.c.bf16 %v1486_v29, %v1485_v41 }
 0x341   :  { %v1459_v3 = vmul.f32 0.1, %v1411_v60  ;;  %v1414_v4 = vadd.f32 %v3198_v1, %v4005_v11  ;;  %v1405_v5 = vpop.f32.mrb[75].mxu1 }
 0x342   :  { %v1457_v6 = vmul.f32 0.1, %v1403_v0  ;;  %v1406_v9 = vadd.f32 %v4005_v11, %v1405_v5  ;;  %3239 = vmatprep.mubr.bf16.mxu0 %v1507_v27 }
 0x343   :  { %v1460_v44 = vmul.f32 0.1, %v1414_v4  ;;  %3240 = vmatmul.mubr.bf16.gmra.mrb[68].mxu0 %v1508_v63  ;;  %v1491_v38 = vmax.f32 %v1411_v60, %v1459_v3 }
 0x344   :  { %v1458_v34 = vmul.f32 0.1, %v1406_v9  ;;  %v1489_v58 = vmax.f32 %v1403_v0, %v1457_v6 }
 0x345   :  { %v1492_v43 = vmax.f32 %v1414_v4, %v1460_v44 }
 0x346   :  { %v1490_v8 = vmax.f32 %v1406_v9, %v1458_v34  ;;  %v3201_v37 = vpop.f32.mrb[76].mxu1 }
 0x347   :  { %v1427_v12 = vadd.f32 %v3201_v37, %v4005_v11  ;;  %v1418_v13 = vpop.f32.mrb[77].mxu1  ;;  %v1510_v14 = vpack.c.bf16 %v1492_v43, %v1491_v38 }
 0x348   :  { %v1419_v32 = vadd.f32 %v4005_v11, %v1418_v13  ;;  %v3202_v15 = vpop.f32.mrb[78].mxu1  ;;  %v1509_v16 = vpack.c.bf16 %v1490_v8, %v1489_v58 }
 0x349   :  { %v1463_v17 = vmul.f32 0.1, %v1427_v12  ;;  %v1430_v18 = vadd.f32 %v3202_v15, %v4005_v11  ;;  %v1421_v19 = vpop.f32.mrb[79].mxu1 }
 0x34a   :  { %v1461_v20 = vmul.f32 0.1, %v1419_v32  ;;  %v1422_v21 = vadd.f32 %v4005_v11, %v1421_v19  ;;  %3243 = vmatprep.mubr.bf16.mxu0 %v1509_v16  ;;  %v3469_v11 = vld [vmem:[#allocation5 + $0x110] sm:$0xff]  }
 0x34b   :  { %v1464_v45 = vmul.f32 0.1, %v1430_v18  ;;  %3244 = vmatmul.mubr.bf16.gmra.mrb[72].mxu0 %v1510_v14  ;;  %v1495_v40 = vmax.f32 %v1427_v12, %v1463_v17  ;;  %3303 = vmatprep.subr.bf16.mxu0 %v3469_v11 }
 0x34c   :  { %v1462_v30 = vmul.f32 0.1, %v1422_v21  ;;  %v1493_v39 = vmax.f32 %v1419_v32, %v1461_v20  ;;  %3304 = vmatpush3.bf16.msra.mxu0 %v3469_v11 }
 0x34d   :  { %v1496_v22 = vmax.f32 %v1430_v18, %v1464_v45  ;;  %3305 = vmatprep.subr.bf16.mxu0 %v3470_v31 }
 0x34e   :  { %v1494_v24 = vmax.f32 %v1422_v21, %v1462_v30 }
 0x34f   :  { %v1512_v26 = vpack.c.bf16 %v1496_v22, %v1495_v40 }
 0x350   :  { %v1511_v47 = vpack.c.bf16 %v1494_v24, %v1493_v39  ;;  %3306 = vmatpush3.bf16.msra.mxu0 %v3470_v31 }
 0x351   :  { %3307 = vmatprep.subr.bf16.mxu0 %v3471_v36 }
 0x352   :  { %3247 = vmatprep.mubr.bf16.mxu0 %v1511_v47 }
 0x353   :  { %3248 = vmatmul.mubr.bf16.gmra.mrb[76].mxu0 %v1512_v26 }
 0x354   :  { %3308 = vmatpush3.bf16.msra.mxu0 %v3471_v36 }
 0x3c6   :  { %v3221_v52 = vpop.f32.mrb[48].mxu0 }
 0x3c7   :  { %v1629_v25 = vadd.f32 %v3221_v52, %v4042_v49  ;;  %v1620_v53 = vpop.f32.mrb[49].mxu0 }
 0x3c8   :  { %v1621_v48 = vadd.f32 %v4042_v49, %v1620_v53  ;;  %v3222_v50 = vpop.f32.mrb[50].mxu0 }
 0x3c9   :  { %v1749_v54 = vmul.f32 0.1, %v1629_v25  ;;  %v1632_v62 = vadd.f32 %v3222_v50, %v4042_v49  ;;  %v1623_v55 = vpop.f32.mrb[51].mxu0 }
 0x3ca   :  { %v1747_v7 = vmul.f32 0.1, %v1621_v48  ;;  %v1624_v56 = vadd.f32 %v4042_v49, %v1623_v55 }
 0x3cb   :  { %v1750_v2 = vmul.f32 0.1, %v1632_v62  ;;  %v1781_v42 = vmax.f32 %v1629_v25, %v1749_v54 }
 0x3cc   :  { %v1748_v33 = vmul.f32 0.1, %v1624_v56  ;;  %v1779_v57 = vmax.f32 %v1621_v48, %v1747_v7 }
 0x3cd   :  { %v1782_v35 = vmax.f32 %v1632_v62, %v1750_v2 }
 0x3ce   :  { %v1780_v41 = vmax.f32 %v1624_v56, %v1748_v33 }
 0x3cf   :  { %v1812_v29 = vpack.c.bf16 %v1782_v35, %v1781_v42 }
 0x3d0   :  { %v1811_v59 = vpack.c.bf16 %v1780_v41, %v1779_v57 }
 0x3d2   :  { %3267 = vmatprep.mubr.bf16.mxu1 %v1811_v59 }
 0x3d3   :  { %3268 = vmatmul.mubr.bf16.vlgmr.msra.gmra.mrb[80].mxu1 %v1812_v29 }
 0x3d6   :  { %v3225_v60 = vpop.f32.mrb[52].mxu0 }
 0x3d7   :  { %v1645_v61 = vadd.f32 %v3225_v60, %v4042_v49  ;;  %v1636_v63 = vpop.f32.mrb[53].mxu0 }
 0x3d8   :  { %v1637_v0 = vadd.f32 %v4042_v49, %v1636_v63  ;;  %v3226_v1 = vpop.f32.mrb[54].mxu0 }
 0x3d9   :  { %v1753_v27 = vmul.f32 0.1, %v1645_v61  ;;  %v1648_v3 = vadd.f32 %v3226_v1, %v4042_v49  ;;  %v1639_v4 = vpop.f32.mrb[55].mxu0 }
 0x3da   :  { %v1751_v5 = vmul.f32 0.1, %v1637_v0  ;;  %v1640_v6 = vadd.f32 %v4042_v49, %v1639_v4 }
 0x3db   :  { %v1754_v9 = vmul.f32 0.1, %v1648_v3  ;;  %v1785_v34 = vmax.f32 %v1645_v61, %v1753_v27 }
 0x3dc   :  { %v1752_v44 = vmul.f32 0.1, %v1640_v6  ;;  %v1783_v43 = vmax.f32 %v1637_v0, %v1751_v5 }
 0x3dd   :  { %v1786_v38 = vmax.f32 %v1648_v3, %v1754_v9 }
 0x3de   :  { %v1784_v10 = vmax.f32 %v1640_v6, %v1752_v44 }
 0x3df   :  { %v1814_v58 = vpack.c.bf16 %v1786_v38, %v1785_v34 }
 0x3e0   :  { %v1813_v8 = vpack.c.bf16 %v1784_v10, %v1783_v43 }
 0x3e2   :  { %3271 = vmatprep.mubr.bf16.mxu1 %v1813_v8 }
 0x3e3   :  { %3272 = vmatmul.mubr.bf16.gmra.mrb[84].mxu1 %v1814_v58 }
 0x3e6   :  { %v3229_v37 = vpop.f32.mrb[56].mxu0 }
 0x3e7   :  { %v1661_v12 = vadd.f32 %v3229_v37, %v4042_v49  ;;  %v1652_v13 = vpop.f32.mrb[57].mxu0 }
 0x3e8   :  { %v1653_v14 = vadd.f32 %v4042_v49, %v1652_v13  ;;  %v3230_v32 = vpop.f32.mrb[58].mxu0 }
 0x3e9   :  { %v1757_v15 = vmul.f32 0.1, %v1661_v12  ;;  %v1664_v16 = vadd.f32 %v3230_v32, %v4042_v49  ;;  %v1655_v17 = vpop.f32.mrb[59].mxu0 }
 0x3ea   :  { %v1755_v18 = vmul.f32 0.1, %v1653_v14  ;;  %v1656_v19 = vadd.f32 %v4042_v49, %v1655_v17 }
 0x3eb   :  { %v1758_v46 = vmul.f32 0.1, %v1664_v16  ;;  %v1789_v21 = vmax.f32 %v1661_v12, %v1757_v15 }
 0x3ec   :  { %v1756_v20 = vmul.f32 0.1, %v1656_v19  ;;  %v1787_v30 = vmax.f32 %v1653_v14, %v1755_v18 }
 0x3ed   :  { %v1790_v45 = vmax.f32 %v1664_v16, %v1758_v46 }
 0x3ee   :  { %v1788_v40 = vmax.f32 %v1656_v19, %v1756_v20 }
 0x3ef   :  { %v1816_v22 = vpack.c.bf16 %v1790_v45, %v1789_v21 }
 0x3f0   :  { %v1815_v23 = vpack.c.bf16 %v1788_v40, %v1787_v30 }
 0x3f2   :  { %3275 = vmatprep.mubr.bf16.mxu1 %v1815_v23 }
 0x3f3   :  { %3276 = vmatmul.mubr.bf16.gmra.mrb[88].mxu1 %v1816_v22 }
 0x3f6   :  { %v3233_v39 = vpop.f32.mrb[60].mxu0 }
 0x3f7   :  { %v1677_v24 = vadd.f32 %v3233_v39, %v4042_v49  ;;  %v1668_v26 = vpop.f32.mrb[61].mxu0 }
 0x3f8   :  { %v1669_v47 = vadd.f32 %v4042_v49, %v1668_v26  ;;  %v3234_v28 = vpop.f32.mrb[62].mxu0 }
 0x3f9   :  { %v1761_v51 = vmul.f32 0.1, %v1677_v24  ;;  %v1680_v11 = vadd.f32 %v3234_v28, %v4042_v49  ;;  %v1671_v31 = vpop.f32.mrb[63].mxu0 }
 0x3fa   :  { %v1759_v36 = vmul.f32 0.1, %v1669_v47  ;;  %v1672_v52 = vadd.f32 %v4042_v49, %v1671_v31 }
 0x3fb   :  { %v1762_v25 = vmul.f32 0.1, %v1680_v11  ;;  %v1793_v48 = vmax.f32 %v1677_v24, %v1761_v51  ;;  %v3472_v51 = vld [vmem:[#allocation5 + $0x128] sm:$0xff]  }
 0x3fc   :  { %v1760_v53 = vmul.f32 0.1, %v1672_v52  ;;  %v1791_v54 = vmax.f32 %v1669_v47, %v1759_v36  ;;  %3309 = vmatprep.subr.bf16.mxu0 %v3472_v51 }
 0x3fd   :  { %v1794_v50 = vmax.f32 %v1680_v11, %v1762_v25  ;;  %3310 = vmatpush3.bf16.msra.mxu0 %v3472_v51 }
 0x3fe   :  { %v1792_v62 = vmax.f32 %v1672_v52, %v1760_v53 }
 0x3ff   :  { %v1818_v55 = vpack.c.bf16 %v1794_v50, %v1793_v48 }
 0x400   :  { %v1817_v7 = vpack.c.bf16 %v1792_v62, %v1791_v54 }
 0x402   :  { %3279 = vmatprep.mubr.bf16.mxu1 %v1817_v7 }
 0x403   :  { %3280 = vmatmul.mubr.bf16.gmra.mrb[92].mxu1 %v1818_v55 }
 0x406   :  { %v3237_v56 = vpop.f32.mrb[64].mxu0 }
 0x407   :  { %v1693_v2 = vadd.f32 %v3237_v56, %v4042_v49  ;;  %v1684_v33 = vpop.f32.mrb[65].mxu0  ;;  %v3473_v56 = vld [vmem:[#allocation5 + $0x130] sm:$0xff]  }
 0x408   :  { %v1685_v42 = vadd.f32 %v4042_v49, %v1684_v33  ;;  %v3238_v35 = vpop.f32.mrb[66].mxu0  ;;  %3311 = vmatprep.subr.bf16.mxu0 %v3473_v56 }
 0x409   :  { %v1765_v57 = vmul.f32 0.1, %v1693_v2  ;;  %v1696_v41 = vadd.f32 %v3238_v35, %v4042_v49  ;;  %v1687_v29 = vpop.f32.mrb[67].mxu0  ;;  %3312 = vmatpush3.bf16.msra.mxu0 %v3473_v56 }
 0x40a   :  { %v1763_v59 = vmul.f32 0.1, %v1685_v42  ;;  %v1688_v60 = vadd.f32 %v4042_v49, %v1687_v29  ;;  %v3474_v29 = vld [vmem:[#allocation5 + $0x138] sm:$0xff]  }
 0x40b   :  { %v1766_v61 = vmul.f32 0.1, %v1696_v41  ;;  %v1797_v0 = vmax.f32 %v1693_v2, %v1765_v57  ;;  %3313 = vmatprep.subr.bf16.mxu0 %v3474_v29 }
 0x40c   :  { %v1764_v63 = vmul.f32 0.1, %v1688_v60  ;;  %v1795_v27 = vmax.f32 %v1685_v42, %v1763_v59 }
 0x40d   :  { %v1798_v1 = vmax.f32 %v1696_v41, %v1766_v61  ;;  %3314 = vmatpush3.bf16.msra.mxu0 %v3474_v29 }
 0x40e   :  { %v1796_v3 = vmax.f32 %v1688_v60, %v1764_v63 }
 0x40f   :  { %v1820_v4 = vpack.c.bf16 %v1798_v1, %v1797_v0 }
 0x410   :  { %v1819_v5 = vpack.c.bf16 %v1796_v3, %v1795_v27 }
 0x412   :  { %3283 = vmatprep.mubr.bf16.mxu1 %v1819_v5 }
 0x413   :  { %3284 = vmatmul.mubr.bf16.gmra.mrb[96].mxu1 %v1820_v4 }
 0x416   :  { %v3241_v6 = vpop.f32.mrb[68].mxu0 }
 0x417   :  { %v1709_v9 = vadd.f32 %v3241_v6, %v4042_v49  ;;  %v1700_v44 = vpop.f32.mrb[69].mxu0 }
 0x418   :  { %v1701_v34 = vadd.f32 %v4042_v49, %v1700_v44  ;;  %v3242_v38 = vpop.f32.mrb[70].mxu0 }
 0x419   :  { %v1769_v43 = vmul.f32 0.1, %v1709_v9  ;;  %v1712_v10 = vadd.f32 %v3242_v38, %v4042_v49  ;;  %v1703_v58 = vpop.f32.mrb[71].mxu0 }
 0x41a   :  { %v1767_v8 = vmul.f32 0.1, %v1701_v34  ;;  %v1704_v37 = vadd.f32 %v4042_v49, %v1703_v58 }
 0x41b   :  { %v1770_v12 = vmul.f32 0.1, %v1712_v10  ;;  %v1801_v14 = vmax.f32 %v1709_v9, %v1769_v43 }
 0x41c   :  { %v1768_v13 = vmul.f32 0.1, %v1704_v37  ;;  %v1799_v15 = vmax.f32 %v1701_v34, %v1767_v8 }
 0x41d   :  { %v1802_v32 = vmax.f32 %v1712_v10, %v1770_v12 }
 0x41e   :  { %v1800_v16 = vmax.f32 %v1704_v37, %v1768_v13  ;;  %v3245_v17 = vpop.f32.mrb[72].mxu0 }
 0x41f   :  { %v1725_v18 = vadd.f32 %v3245_v17, %v4042_v49  ;;  %v1716_v19 = vpop.f32.mrb[73].mxu0  ;;  %v1822_v46 = vpack.c.bf16 %v1802_v32, %v1801_v14 }
 0x420   :  { %v1717_v20 = vadd.f32 %v4042_v49, %v1716_v19  ;;  %v3246_v21 = vpop.f32.mrb[74].mxu0  ;;  %v1821_v45 = vpack.c.bf16 %v1800_v16, %v1799_v15 }
 0x421   :  { %v1773_v30 = vmul.f32 0.1, %v1725_v18  ;;  %v1728_v40 = vadd.f32 %v3246_v21, %v4042_v49  ;;  %v1719_v22 = vpop.f32.mrb[75].mxu0 }
 0x422   :  { %v1771_v23 = vmul.f32 0.1, %v1717_v20  ;;  %v1720_v39 = vadd.f32 %v4042_v49, %v1719_v22  ;;  %3287 = vmatprep.mubr.bf16.mxu1 %v1821_v45 }
 0x423   :  { %v1774_v24 = vmul.f32 0.1, %v1728_v40  ;;  %3288 = vmatmul.mubr.bf16.gmra.mrb[100].mxu1 %v1822_v46  ;;  %v1805_v47 = vmax.f32 %v1725_v18, %v1773_v30 }
 0x424   :  { %v1772_v26 = vmul.f32 0.1, %v1720_v39  ;;  %v1803_v11 = vmax.f32 %v1717_v20, %v1771_v23 }
 0x425   :  { %v1806_v28 = vmax.f32 %v1728_v40, %v1774_v24 }
 0x426   :  { %v1804_v31 = vmax.f32 %v1720_v39, %v1772_v26  ;;  %v3249_v36 = vpop.f32.mrb[76].mxu0 }
 0x427   :  { %v1741_v52 = vadd.f32 %v3249_v36, %v4042_v49  ;;  %v1732_v25 = vpop.f32.mrb[77].mxu0  ;;  %v1824_v53 = vpack.c.bf16 %v1806_v28, %v1805_v47 }
 0x428   :  { %v1733_v48 = vadd.f32 %v4042_v49, %v1732_v25  ;;  %v3250_v50 = vpop.f32.mrb[78].mxu0  ;;  %v1823_v54 = vpack.c.bf16 %v1804_v31, %v1803_v11 }
 0x429   :  { %v1777_v62 = vmul.f32 0.1, %v1741_v52  ;;  %v1744_v55 = vadd.f32 %v3250_v50, %v4042_v49  ;;  %v1735_v7 = vpop.f32.mrb[79].mxu0 }
 0x42a   :  { %v1775_v2 = vmul.f32 0.1, %v1733_v48  ;;  %v1736_v33 = vadd.f32 %v4042_v49, %v1735_v7  ;;  %3291 = vmatprep.mubr.bf16.mxu1 %v1823_v54  ;;  %v4079_v49 = vld [vmem:[%s4171_s6 + $0x3] ss:$0 sm:$0xff] }
 0x42b   :  { %v1778_v42 = vmul.f32 0.1, %v1744_v55  ;;  %3292 = vmatmul.mubr.bf16.gmra.mrb[104].mxu1 %v1824_v53  ;;  %v1809_v57 = vmax.f32 %v1741_v52, %v1777_v62 }
 0x42c   :  { %v1776_v35 = vmul.f32 0.1, %v1736_v33  ;;  %v1807_v59 = vmax.f32 %v1733_v48, %v1775_v2 }
 0x42d   :  { %v1810_v41 = vmax.f32 %v1744_v55, %v1778_v42 }
 0x42e   :  { %v1808_v60 = vmax.f32 %v1736_v33, %v1776_v35 }
 0x42f   :  { %v1826_v61 = vpack.c.bf16 %v1810_v41, %v1809_v57 }
 0x430   :  { %v1825_v63 = vpack.c.bf16 %v1808_v60, %v1807_v59 }
 0x432   :  { %3295 = vmatprep.mubr.bf16.mxu1 %v1825_v63 }
 0x433   :  { %3296 = vmatmul.mubr.bf16.gmra.mrb[108].mxu1 %v1826_v61 }
 0x4a6   :  { %v3269_v0 = vpop.f32.mrb[80].mxu1 }
 0x4a7   :  { %v1943_v1 = vadd.f32 %v3269_v0, %v4079_v49  ;;  %v1934_v27 = vpop.f32.mrb[81].mxu1 }
 0x4a8   :  { %v1935_v3 = vadd.f32 %v4079_v49, %v1934_v27  ;;  %v3270_v4 = vpop.f32.mrb[82].mxu1 }
 0x4a9   :  { %v2063_v5 = vmul.f32 0.1, %v1943_v1  ;;  %v1946_v6 = vadd.f32 %v3270_v4, %v4079_v49  ;;  %v1937_v9 = vpop.f32.mrb[83].mxu1 }
 0x4aa   :  { %v2061_v44 = vmul.f32 0.1, %v1935_v3  ;;  %v1938_v34 = vadd.f32 %v4079_v49, %v1937_v9 }
 0x4ab   :  { %v2064_v38 = vmul.f32 0.1, %v1946_v6  ;;  %v2095_v10 = vmax.f32 %v1943_v1, %v2063_v5 }
 0x4ac   :  { %v2062_v43 = vmul.f32 0.1, %v1938_v34  ;;  %v2093_v8 = vmax.f32 %v1935_v3, %v2061_v44 }
 0x4ad   :  { %v2096_v58 = vmax.f32 %v1946_v6, %v2064_v38 }
 0x4ae   :  { %v2094_v37 = vmax.f32 %v1938_v34, %v2062_v43 }
 0x4af   :  { %v2126_v12 = vpack.c.bf16 %v2096_v58, %v2095_v10 }
 0x4b0   :  { %v2125_v13 = vpack.c.bf16 %v2094_v37, %v2093_v8 }
 0x4b2   :  { %3315 = vmatprep.mubr.bf16.mxu0 %v2125_v13 }
 0x4b3   :  { %3316 = vmatmul.mubr.bf16.vlgmr.msra.gmra.mrb[80].mxu0 %v2126_v12 }
 0x4b6   :  { %v3273_v14 = vpop.f32.mrb[84].mxu1 }
 0x4b7   :  { %v1959_v32 = vadd.f32 %v3273_v14, %v4079_v49  ;;  %v1950_v15 = vpop.f32.mrb[85].mxu1 }
 0x4b8   :  { %v1951_v16 = vadd.f32 %v4079_v49, %v1950_v15  ;;  %v3274_v17 = vpop.f32.mrb[86].mxu1 }
 0x4b9   :  { %v2067_v18 = vmul.f32 0.1, %v1959_v32  ;;  %v1962_v19 = vadd.f32 %v3274_v17, %v4079_v49  ;;  %v1953_v46 = vpop.f32.mrb[87].mxu1 }
 0x4ba   :  { %v2065_v20 = vmul.f32 0.1, %v1951_v16  ;;  %v1954_v21 = vadd.f32 %v4079_v49, %v1953_v46 }
 0x4bb   :  { %v2068_v45 = vmul.f32 0.1, %v1962_v19  ;;  %v2099_v40 = vmax.f32 %v1959_v32, %v2067_v18 }
 0x4bc   :  { %v2066_v30 = vmul.f32 0.1, %v1954_v21  ;;  %v2097_v23 = vmax.f32 %v1951_v16, %v2065_v20 }
 0x4bd   :  { %v2100_v22 = vmax.f32 %v1962_v19, %v2068_v45 }
 0x4be   :  { %v2098_v39 = vmax.f32 %v1954_v21, %v2066_v30 }
 0x4bf   :  { %v2128_v24 = vpack.c.bf16 %v2100_v22, %v2099_v40 }
 0x4c0   :  { %v2127_v26 = vpack.c.bf16 %v2098_v39, %v2097_v23 }
 0x4c2   :  { %3319 = vmatprep.mubr.bf16.mxu0 %v2127_v26 }
 0x4c3   :  { %3320 = vmatmul.mubr.bf16.gmra.mrb[84].mxu0 %v2128_v24 }
 0x4c6   :  { %v3277_v47 = vpop.f32.mrb[88].mxu1 }
 0x4c7   :  { %v1975_v28 = vadd.f32 %v3277_v47, %v4079_v49  ;;  %v1966_v51 = vpop.f32.mrb[89].mxu1 }
 0x4c8   :  { %v1967_v11 = vadd.f32 %v4079_v49, %v1966_v51  ;;  %v3278_v31 = vpop.f32.mrb[90].mxu1 }
 0x4c9   :  { %v2071_v36 = vmul.f32 0.1, %v1975_v28  ;;  %v1978_v52 = vadd.f32 %v3278_v31, %v4079_v49  ;;  %v1969_v25 = vpop.f32.mrb[91].mxu1 }
 0x4ca   :  { %v2069_v53 = vmul.f32 0.1, %v1967_v11  ;;  %v1970_v48 = vadd.f32 %v4079_v49, %v1969_v25 }
 0x4cb   :  { %v2072_v50 = vmul.f32 0.1, %v1978_v52  ;;  %v2103_v62 = vmax.f32 %v1975_v28, %v2071_v36 }
 0x4cc   :  { %v2070_v54 = vmul.f32 0.1, %v1970_v48  ;;  %v2101_v7 = vmax.f32 %v1967_v11, %v2069_v53 }
 0x4cd   :  { %v2104_v55 = vmax.f32 %v1978_v52, %v2072_v50 }
 0x4ce   :  { %v2102_v56 = vmax.f32 %v1970_v48, %v2070_v54 }
 0x4cf   :  { %v2130_v2 = vpack.c.bf16 %v2104_v55, %v2103_v62 }
 0x4d0   :  { %v2129_v33 = vpack.c.bf16 %v2102_v56, %v2101_v7 }
 0x4d2   :  { %3323 = vmatprep.mubr.bf16.mxu0 %v2129_v33 }
 0x4d3   :  { %3324 = vmatmul.mubr.bf16.gmra.mrb[88].mxu0 %v2130_v2 }
 0x4d6   :  { %v3281_v42 = vpop.f32.mrb[92].mxu1 }
 0x4d7   :  { %v1991_v35 = vadd.f32 %v3281_v42, %v4079_v49  ;;  %v1982_v57 = vpop.f32.mrb[93].mxu1 }
 0x4d8   :  { %v1983_v41 = vadd.f32 %v4079_v49, %v1982_v57  ;;  %v3282_v29 = vpop.f32.mrb[94].mxu1 }
 0x4d9   :  { %v2075_v59 = vmul.f32 0.1, %v1991_v35  ;;  %v1994_v60 = vadd.f32 %v3282_v29, %v4079_v49  ;;  %v1985_v61 = vpop.f32.mrb[95].mxu1 }
 0x4da   :  { %v2073_v63 = vmul.f32 0.1, %v1983_v41  ;;  %v1986_v0 = vadd.f32 %v4079_v49, %v1985_v61 }
 0x4db   :  { %v2076_v1 = vmul.f32 0.1, %v1994_v60  ;;  %v2107_v3 = vmax.f32 %v1991_v35, %v2075_v59 }
 0x4dc   :  { %v2074_v27 = vmul.f32 0.1, %v1986_v0  ;;  %v2105_v5 = vmax.f32 %v1983_v41, %v2073_v63 }
 0x4dd   :  { %v2108_v4 = vmax.f32 %v1994_v60, %v2076_v1 }
 0x4de   :  { %v2106_v6 = vmax.f32 %v1986_v0, %v2074_v27 }
 0x4df   :  { %v2132_v9 = vpack.c.bf16 %v2108_v4, %v2107_v3 }
 0x4e0   :  { %v2131_v44 = vpack.c.bf16 %v2106_v6, %v2105_v5 }
 0x4e2   :  { %3327 = vmatprep.mubr.bf16.mxu0 %v2131_v44 }
 0x4e3   :  { %3328 = vmatmul.mubr.bf16.gmra.mrb[92].mxu0 %v2132_v9 }
 0x4e6   :  { %v3285_v34 = vpop.f32.mrb[96].mxu1 }
 0x4e7   :  { %v2007_v38 = vadd.f32 %v3285_v34, %v4079_v49  ;;  %v1998_v43 = vpop.f32.mrb[97].mxu1 }
 0x4e8   :  { %v1999_v10 = vadd.f32 %v4079_v49, %v1998_v43  ;;  %v3286_v58 = vpop.f32.mrb[98].mxu1 }
 0x4e9   :  { %v2079_v8 = vmul.f32 0.1, %v2007_v38  ;;  %v2010_v37 = vadd.f32 %v3286_v58, %v4079_v49  ;;  %v2001_v12 = vpop.f32.mrb[99].mxu1 }
 0x4ea   :  { %v2077_v13 = vmul.f32 0.1, %v1999_v10  ;;  %v2002_v14 = vadd.f32 %v4079_v49, %v2001_v12 }
 0x4eb   :  { %v2080_v32 = vmul.f32 0.1, %v2010_v37  ;;  %v2111_v16 = vmax.f32 %v2007_v38, %v2079_v8 }
 0x4ec   :  { %v2078_v15 = vmul.f32 0.1, %v2002_v14  ;;  %v2109_v18 = vmax.f32 %v1999_v10, %v2077_v13 }
 0x4ed   :  { %v2112_v17 = vmax.f32 %v2010_v37, %v2080_v32 }
 0x4ee   :  { %v2110_v19 = vmax.f32 %v2002_v14, %v2078_v15  ;;  %v4116_v14 = vld [vmem:[%s4171_s6 + $0x4] ss:$0 sm:$0xff]  ;;  %s3552_s6 = smov [#allocation7]  }
 0x4ef   :  { %v2134_v46 = vpack.c.bf16 %v2112_v17, %v2111_v16  ;;  %s2604_s5 = sshll.u32 %s3552_s6, 4  ;;  %s2605_s5 = int_to_ptr.vmem [resolvable:$true] %s2604_s5 }
 0x4f0   :  { %v2133_v20 = vpack.c.bf16 %v2110_v19, %v2109_v18  ;;  %s3519_s26 = scalar_lea.vmem %s2605_s5, 2048  ;;  %p3524_p3 = scmp.lt.s32.totalorder %s2605_s5, %s2605_s5 }
 0x4f1   :  { %p3520_p2 = scmp.ne.s32.totalorder %s2605_s5, %s3519_s26  ;;  %p3525_p4 = scmp.lt.s32.totalorder %s3519_s26, %s3519_s26 }
 0x4f2   :  { %3331 = vmatprep.mubr.bf16.mxu0 %v2133_v20 }
 0x4f3   :  { %3332 = vmatmul.mubr.bf16.gmra.mrb[96].mxu0 %v2134_v46  ;;  %p3526_p5 = por %p3525_p4, %p3524_p3 }
 0x4f5   :  { %p3527_p6 = pnand %p3526_p5, %p3520_p2 }
 0x4f6   :  { %v3289_v21 = vpop.f32.mrb[100].mxu1 }
 0x4f7   :  { %v2023_v45 = vadd.f32 %v3289_v21, %v4079_v49  ;;  %v2014_v30 = vpop.f32.mrb[101].mxu1 }
 0x4f8   :  { %v2015_v40 = vadd.f32 %v4079_v49, %v2014_v30  ;;  %v3290_v22 = vpop.f32.mrb[102].mxu1 }
 0x4f9   :  { %v2083_v23 = vmul.f32 0.1, %v2023_v45  ;;  %v2026_v39 = vadd.f32 %v3290_v22, %v4079_v49  ;;  %v2017_v24 = vpop.f32.mrb[103].mxu1 }
 0x4fa   :  { %v2081_v26 = vmul.f32 0.1, %v2015_v40  ;;  %v2018_v47 = vadd.f32 %v4079_v49, %v2017_v24 }
 0x4fb   :  { %v2084_v28 = vmul.f32 0.1, %v2026_v39  ;;  %v2115_v11 = vmax.f32 %v2023_v45, %v2083_v23 }
 0x4fc   :  { %v2082_v51 = vmul.f32 0.1, %v2018_v47  ;;  %v2113_v36 = vmax.f32 %v2015_v40, %v2081_v26 }
 0x4fd   :  { %v2116_v31 = vmax.f32 %v2026_v39, %v2084_v28 }
 0x4fe   :  { %v2114_v52 = vmax.f32 %v2018_v47, %v2082_v51  ;;  %v3293_v25 = vpop.f32.mrb[104].mxu1 }
 0x4ff   :  { %v2039_v53 = vadd.f32 %v3293_v25, %v4079_v49  ;;  %v2030_v48 = vpop.f32.mrb[105].mxu1  ;;  %v2136_v50 = vpack.c.bf16 %v2116_v31, %v2115_v11 }
 0x500   :  { %v2031_v54 = vadd.f32 %v4079_v49, %v2030_v48  ;;  %v3294_v62 = vpop.f32.mrb[106].mxu1  ;;  %v2135_v55 = vpack.c.bf16 %v2114_v52, %v2113_v36 }
 0x501   :  { %v2087_v7 = vmul.f32 0.1, %v2039_v53  ;;  %v2042_v56 = vadd.f32 %v3294_v62, %v4079_v49  ;;  %v2033_v2 = vpop.f32.mrb[107].mxu1 }
 0x502   :  { %v2085_v33 = vmul.f32 0.1, %v2031_v54  ;;  %v2034_v42 = vadd.f32 %v4079_v49, %v2033_v2  ;;  %3335 = vmatprep.mubr.bf16.mxu0 %v2135_v55 }
 0x503   :  { %v2088_v35 = vmul.f32 0.1, %v2042_v56  ;;  %3336 = vmatmul.mubr.bf16.gmra.mrb[100].mxu0 %v2136_v50  ;;  %v2119_v41 = vmax.f32 %v2039_v53, %v2087_v7 }
 0x504   :  { %v2086_v57 = vmul.f32 0.1, %v2034_v42  ;;  %v2117_v59 = vmax.f32 %v2031_v54, %v2085_v33 }
 0x505   :  { %v2120_v29 = vmax.f32 %v2042_v56, %v2088_v35 }
 0x506   :  { %v2118_v60 = vmax.f32 %v2034_v42, %v2086_v57  ;;  %v3297_v61 = vpop.f32.mrb[108].mxu1 }
 0x507   :  { %v2055_v63 = vadd.f32 %v3297_v61, %v4079_v49  ;;  %v2046_v0 = vpop.f32.mrb[109].mxu1  ;;  %v2138_v1 = vpack.c.bf16 %v2120_v29, %v2119_v41 }
 0x508   :  { %v2047_v27 = vadd.f32 %v4079_v49, %v2046_v0  ;;  %v3298_v3 = vpop.f32.mrb[110].mxu1  ;;  %v2137_v4 = vpack.c.bf16 %v2118_v60, %v2117_v59 }
 0x509   :  { %v2091_v5 = vmul.f32 0.1, %v2055_v63  ;;  %v2058_v6 = vadd.f32 %v3298_v3, %v4079_v49  ;;  %v2049_v9 = vpop.f32.mrb[111].mxu1 }
 0x50a   :  { %v2089_v44 = vmul.f32 0.1, %v2047_v27  ;;  %v2050_v34 = vadd.f32 %v4079_v49, %v2049_v9  ;;  %3339 = vmatprep.mubr.bf16.mxu0 %v2137_v4 }
 0x50b   :  { %v2092_v38 = vmul.f32 0.1, %v2058_v6  ;;  %3340 = vmatmul.mubr.bf16.gmra.mrb[104].mxu0 %v2138_v1  ;;  %v2123_v10 = vmax.f32 %v2055_v63, %v2091_v5 }
 0x50c   :  { %v2090_v43 = vmul.f32 0.1, %v2050_v34  ;;  %v2121_v8 = vmax.f32 %v2047_v27, %v2089_v44 }
 0x50d   :  { %v2124_v58 = vmax.f32 %v2058_v6, %v2092_v38 }
 0x50e   :  { %v2122_v37 = vmax.f32 %v2050_v34, %v2090_v43 }
 0x50f   :  { %v2140_v12 = vpack.c.bf16 %v2124_v58, %v2123_v10 }
 0x510   :  { %v2139_v13 = vpack.c.bf16 %v2122_v37, %v2121_v8 }
 0x512   :  { %3343 = vmatprep.mubr.bf16.mxu0 %v2139_v13 }
 0x513   :  { %3344 = vmatmul.mubr.bf16.gmra.mrb[108].mxu0 %v2140_v12 }
 0x586   :  { %v3317_v32 = vpop.f32.mrb[80].mxu0 }
 0x587   :  { %v2257_v49 = vadd.f32 %v3317_v32, %v4116_v14  ;;  %v2248_v15 = vpop.f32.mrb[81].mxu0 }
 0x588   :  { %v2249_v16 = vadd.f32 %v4116_v14, %v2248_v15  ;;  %v3318_v17 = vpop.f32.mrb[82].mxu0 }
 0x589   :  { %v2377_v18 = vmul.f32 0.1, %v2257_v49  ;;  %v2260_v19 = vadd.f32 %v3318_v17, %v4116_v14  ;;  %v2251_v46 = vpop.f32.mrb[83].mxu0 }
 0x58a   :  { %v2375_v20 = vmul.f32 0.1, %v2249_v16  ;;  %v2252_v21 = vadd.f32 %v4116_v14, %v2251_v46 }
 0x58b   :  { %v2378_v45 = vmul.f32 0.1, %v2260_v19  ;;  %v2409_v40 = vmax.f32 %v2257_v49, %v2377_v18 }
 0x58c   :  { %v2376_v30 = vmul.f32 0.1, %v2252_v21  ;;  %v2407_v23 = vmax.f32 %v2249_v16, %v2375_v20 }
 0x58d   :  { %v2410_v22 = vmax.f32 %v2260_v19, %v2378_v45 }
 0x58e   :  { %v2408_v39 = vmax.f32 %v2252_v21, %v2376_v30 }
 0x58f   :  { %v2788_v24 = vpack.c.bf16 %v2410_v22, %v2409_v40 }
 0x590   :  { %v2783_v26 = vpack.c.bf16 %v2408_v39, %v2407_v23 }
 0x591   :  { %2860 = vst [vmem:[#allocation7 + $0x8] sm:$0xff] %v2788_v24  }
 0x592   :  { %2784 = vst [vmem:[#allocation7] sm:$0xff] %v2783_v26  }
 0x596   :  { %v3321_v47 = vpop.f32.mrb[84].mxu0 }
 0x597   :  { %v2273_v28 = vadd.f32 %v3321_v47, %v4116_v14  ;;  %v2264_v51 = vpop.f32.mrb[85].mxu0 }
 0x598   :  { %v2265_v11 = vadd.f32 %v4116_v14, %v2264_v51  ;;  %v3322_v31 = vpop.f32.mrb[86].mxu0 }
 0x599   :  { %v2381_v36 = vmul.f32 0.1, %v2273_v28  ;;  %v2276_v52 = vadd.f32 %v3322_v31, %v4116_v14  ;;  %v2267_v25 = vpop.f32.mrb[87].mxu0 }
 0x59a   :  { %v2379_v53 = vmul.f32 0.1, %v2265_v11  ;;  %v2268_v48 = vadd.f32 %v4116_v14, %v2267_v25 }
 0x59b   :  { %v2382_v50 = vmul.f32 0.1, %v2276_v52  ;;  %v2413_v62 = vmax.f32 %v2273_v28, %v2381_v36 }
 0x59c   :  { %v2380_v54 = vmul.f32 0.1, %v2268_v48  ;;  %v2411_v7 = vmax.f32 %v2265_v11, %v2379_v53 }
 0x59d   :  { %v2414_v55 = vmax.f32 %v2276_v52, %v2382_v50 }
 0x59e   :  { %v2412_v56 = vmax.f32 %v2268_v48, %v2380_v54 }
 0x59f   :  { %v2798_v2 = vpack.c.bf16 %v2414_v55, %v2413_v62 }
 0x5a0   :  { %v2793_v33 = vpack.c.bf16 %v2412_v56, %v2411_v7 }
 0x5a1   :  { %2862 = vst [vmem:[#allocation7 + $0x18] sm:$0xff] %v2798_v2  }
 0x5a2   :  { %2861 = vst [vmem:[#allocation7 + $0x10] sm:$0xff] %v2793_v33  }
 0x5a6   :  { %v3325_v42 = vpop.f32.mrb[88].mxu0 }
 0x5a7   :  { %v2289_v35 = vadd.f32 %v3325_v42, %v4116_v14  ;;  %v2280_v57 = vpop.f32.mrb[89].mxu0 }
 0x5a8   :  { %v2281_v41 = vadd.f32 %v4116_v14, %v2280_v57  ;;  %v3326_v29 = vpop.f32.mrb[90].mxu0 }
 0x5a9   :  { %v2385_v59 = vmul.f32 0.1, %v2289_v35  ;;  %v2292_v60 = vadd.f32 %v3326_v29, %v4116_v14  ;;  %v2283_v61 = vpop.f32.mrb[91].mxu0 }
 0x5aa   :  { %v2383_v63 = vmul.f32 0.1, %v2281_v41  ;;  %v2284_v0 = vadd.f32 %v4116_v14, %v2283_v61 }
 0x5ab   :  { %v2386_v1 = vmul.f32 0.1, %v2292_v60  ;;  %v2417_v3 = vmax.f32 %v2289_v35, %v2385_v59 }
 0x5ac   :  { %v2384_v27 = vmul.f32 0.1, %v2284_v0  ;;  %v2415_v5 = vmax.f32 %v2281_v41, %v2383_v63 }
 0x5ad   :  { %v2418_v4 = vmax.f32 %v2292_v60, %v2386_v1 }
 0x5ae   :  { %v2416_v6 = vmax.f32 %v2284_v0, %v2384_v27 }
 0x5af   :  { %v2808_v9 = vpack.c.bf16 %v2418_v4, %v2417_v3 }
 0x5b0   :  { %v2803_v44 = vpack.c.bf16 %v2416_v6, %v2415_v5 }
 0x5b1   :  { %2864 = vst [vmem:[#allocation7 + $0x28] sm:$0xff] %v2808_v9  }
 0x5b2   :  { %2863 = vst [vmem:[#allocation7 + $0x20] sm:$0xff] %v2803_v44  }
 0x5b6   :  { %v3329_v34 = vpop.f32.mrb[92].mxu0 }
 0x5b7   :  { %v2305_v38 = vadd.f32 %v3329_v34, %v4116_v14  ;;  %v2296_v43 = vpop.f32.mrb[93].mxu0 }
 0x5b8   :  { %v2297_v10 = vadd.f32 %v4116_v14, %v2296_v43  ;;  %v3330_v58 = vpop.f32.mrb[94].mxu0 }
 0x5b9   :  { %v2389_v8 = vmul.f32 0.1, %v2305_v38  ;;  %v2308_v37 = vadd.f32 %v3330_v58, %v4116_v14  ;;  %v2299_v12 = vpop.f32.mrb[95].mxu0 }
 0x5ba   :  { %v2387_v13 = vmul.f32 0.1, %v2297_v10  ;;  %v2300_v32 = vadd.f32 %v4116_v14, %v2299_v12 }
 0x5bb   :  { %v2390_v49 = vmul.f32 0.1, %v2308_v37  ;;  %v2421_v16 = vmax.f32 %v2305_v38, %v2389_v8 }
 0x5bc   :  { %v2388_v15 = vmul.f32 0.1, %v2300_v32  ;;  %v2419_v18 = vmax.f32 %v2297_v10, %v2387_v13 }
 0x5bd   :  { %v2422_v17 = vmax.f32 %v2308_v37, %v2390_v49 }
 0x5be   :  { %v2420_v19 = vmax.f32 %v2300_v32, %v2388_v15 }
 0x5bf   :  { %v2818_v46 = vpack.c.bf16 %v2422_v17, %v2421_v16 }
 0x5c0   :  { %v2813_v20 = vpack.c.bf16 %v2420_v19, %v2419_v18 }
 0x5c1   :  { %2866 = vst [vmem:[#allocation7 + $0x38] sm:$0xff] %v2818_v46  }
 0x5c2   :  { %2865 = vst [vmem:[#allocation7 + $0x30] sm:$0xff] %v2813_v20  }
 0x5c6   :  { %v3333_v21 = vpop.f32.mrb[96].mxu0 }
 0x5c7   :  { %v2321_v45 = vadd.f32 %v3333_v21, %v4116_v14  ;;  %v2312_v30 = vpop.f32.mrb[97].mxu0 }
 0x5c8   :  { %v2313_v40 = vadd.f32 %v4116_v14, %v2312_v30  ;;  %v3334_v22 = vpop.f32.mrb[98].mxu0 }
 0x5c9   :  { %v2393_v23 = vmul.f32 0.1, %v2321_v45  ;;  %v2324_v39 = vadd.f32 %v3334_v22, %v4116_v14  ;;  %v2315_v24 = vpop.f32.mrb[99].mxu0 }
 0x5ca   :  { %v2391_v26 = vmul.f32 0.1, %v2313_v40  ;;  %v2316_v47 = vadd.f32 %v4116_v14, %v2315_v24 }
 0x5cb   :  { %v2394_v28 = vmul.f32 0.1, %v2324_v39  ;;  %v2425_v11 = vmax.f32 %v2321_v45, %v2393_v23 }
 0x5cc   :  { %v2392_v51 = vmul.f32 0.1, %v2316_v47  ;;  %v2423_v36 = vmax.f32 %v2313_v40, %v2391_v26 }
 0x5cd   :  { %v2426_v31 = vmax.f32 %v2324_v39, %v2394_v28 }
 0x5ce   :  { %v2424_v52 = vmax.f32 %v2316_v47, %v2392_v51 }
 0x5cf   :  { %v2828_v25 = vpack.c.bf16 %v2426_v31, %v2425_v11 }
 0x5d0   :  { %v2823_v53 = vpack.c.bf16 %v2424_v52, %v2423_v36 }
 0x5d1   :  { %2868 = vst [vmem:[#allocation7 + $0x48] sm:$0xff] %v2828_v25  }
 0x5d2   :  { %2867 = vst [vmem:[#allocation7 + $0x40] sm:$0xff] %v2823_v53  }
 0x5d6   :  { %v3337_v48 = vpop.f32.mrb[100].mxu0 }
 0x5d7   :  { %v2337_v50 = vadd.f32 %v3337_v48, %v4116_v14  ;;  %v2328_v54 = vpop.f32.mrb[101].mxu0 }
 0x5d8   :  { %v2329_v62 = vadd.f32 %v4116_v14, %v2328_v54  ;;  %v3338_v55 = vpop.f32.mrb[102].mxu0 }
 0x5d9   :  { %v2397_v7 = vmul.f32 0.1, %v2337_v50  ;;  %v2340_v56 = vadd.f32 %v3338_v55, %v4116_v14  ;;  %v2331_v2 = vpop.f32.mrb[103].mxu0 }
 0x5da   :  { %v2395_v33 = vmul.f32 0.1, %v2329_v62  ;;  %v2332_v42 = vadd.f32 %v4116_v14, %v2331_v2 }
 0x5db   :  { %v2398_v35 = vmul.f32 0.1, %v2340_v56  ;;  %v2429_v41 = vmax.f32 %v2337_v50, %v2397_v7 }
 0x5dc   :  { %v2396_v57 = vmul.f32 0.1, %v2332_v42  ;;  %v2427_v59 = vmax.f32 %v2329_v62, %v2395_v33 }
 0x5dd   :  { %v2430_v29 = vmax.f32 %v2340_v56, %v2398_v35 }
 0x5de   :  { %v2428_v60 = vmax.f32 %v2332_v42, %v2396_v57  ;;  %v3341_v61 = vpop.f32.mrb[104].mxu0 }
 0x5df   :  { %v2838_v63 = vpack.c.bf16 %v2430_v29, %v2429_v41  ;;  %v2353_v0 = vadd.f32 %v3341_v61, %v4116_v14  ;;  %v2344_v1 = vpop.f32.mrb[105].mxu0 }
 0x5e0   :  { %v2833_v27 = vpack.c.bf16 %v2428_v60, %v2427_v59  ;;  %v2345_v3 = vadd.f32 %v4116_v14, %v2344_v1  ;;  %v3342_v4 = vpop.f32.mrb[106].mxu0 }
 0x5e1   :  { %2870 = vst [vmem:[#allocation7 + $0x58] sm:$0xff] %v2838_v63   ;;  %v2401_v5 = vmul.f32 0.1, %v2353_v0  ;;  %v2356_v6 = vadd.f32 %v3342_v4, %v4116_v14  ;;  %v2347_v9 = vpop.f32.mrb[107].mxu0 }
 0x5e2   :  { %2869 = vst [vmem:[#allocation7 + $0x50] sm:$0xff] %v2833_v27   ;;  %v2399_v44 = vmul.f32 0.1, %v2345_v3  ;;  %v2348_v34 = vadd.f32 %v4116_v14, %v2347_v9 }
 0x5e3   :  { %v2402_v38 = vmul.f32 0.1, %v2356_v6  ;;  %v2433_v10 = vmax.f32 %v2353_v0, %v2401_v5 }
 0x5e4   :  { %v2400_v43 = vmul.f32 0.1, %v2348_v34  ;;  %v2431_v8 = vmax.f32 %v2345_v3, %v2399_v44 }
 0x5e5   :  { %v2434_v58 = vmax.f32 %v2356_v6, %v2402_v38 }
 0x5e6   :  { %v2432_v37 = vmax.f32 %v2348_v34, %v2400_v43  ;;  %v3345_v12 = vpop.f32.mrb[108].mxu0 }
 0x5e7   :  { %v2848_v13 = vpack.c.bf16 %v2434_v58, %v2433_v10  ;;  %v2369_v32 = vadd.f32 %v3345_v12, %v4116_v14  ;;  %v2360_v49 = vpop.f32.mrb[109].mxu0 }
 0x5e8   :  { %v2843_v15 = vpack.c.bf16 %v2432_v37, %v2431_v8  ;;  %v2361_v16 = vadd.f32 %v4116_v14, %v2360_v49  ;;  %v3346_v17 = vpop.f32.mrb[110].mxu0 }
 0x5e9   :  { %2872 = vst [vmem:[#allocation7 + $0x68] sm:$0xff] %v2848_v13   ;;  %v2405_v18 = vmul.f32 0.1, %v2369_v32  ;;  %v2372_v19 = vadd.f32 %v3346_v17, %v4116_v14  ;;  %v2363_v46 = vpop.f32.mrb[111].mxu0 }
 0x5ea   :  { %2871 = vst [vmem:[#allocation7 + $0x60] sm:$0xff] %v2843_v15   ;;  %v2403_v20 = vmul.f32 0.1, %v2361_v16  ;;  %v2364_v21 = vadd.f32 %v4116_v14, %v2363_v46 }
 0x5eb   :  { %v2406_v45 = vmul.f32 0.1, %v2372_v19  ;;  %v2437_v40 = vmax.f32 %v2369_v32, %v2405_v18 }
 0x5ec   :  { %v2404_v30 = vmul.f32 0.1, %v2364_v21  ;;  %v2435_v23 = vmax.f32 %v2361_v16, %v2403_v20 }
 0x5ed   :  { %v2438_v22 = vmax.f32 %v2372_v19, %v2406_v45 }
 0x5ee   :  { %v2436_v39 = vmax.f32 %v2364_v21, %v2404_v30 }
 0x5ef   :  { %v2858_v24 = vpack.c.bf16 %v2438_v22, %v2437_v40 }
 0x5f0   :  { %v2853_v26 = vpack.c.bf16 %v2436_v39, %v2435_v23 }
 0x5f1   :  { %2874 = vst [vmem:[#allocation7 + $0x78] sm:$0xff] %v2858_v24  }
 0x5f2   :  { %2873 = vst [vmem:[#allocation7 + $0x70] sm:$0xff] %v2853_v26  }
 0x5f3   :  { %3530 = shalt.err (!%p3527_p6)
}
 0x5f4   :  { %s3531_s29 = scalar_lea.hbm %s4172_s7, 2048 }
 0x5f5   :  { %p3532_p7 = scmp.ne.s32.totalorder %s4172_s7, %s3531_s29  ;;  %p3535_p8 = scmp.lt.u32.totalorder %s3531_s29, %s4172_s7 }
 0x5f7   :  { %p3537_p9 = pnand %p3535_p8, %p3532_p7 }
 0x5f9   :  { %3540 = shalt.err (!%p3537_p9)
}
 0x5fa   :  { %2610 = dma.vmem_to_hbm [thread:$0]  %s2605_s5, 2048, %s4172_s7, [#allocation4], %s3548_s11, %s3548_s11, %s3549_s12  }
 0x5fb   :  { %3545 = dma.done.wait [#allocation4], 2048  }
 0x5fc   :  { %3546 = vsyncadd [#allocation4], 4294965248 }
 0x5fd   :  { %2614 = vsyncpa [#allocation3], 1 }
 0x5fe   :  { %2615 = vsyncpa [#allocation6], 1 }
 0x5ff   :  { %2616 = vsyncpa [#allocation4], 1 }

</bundles_post_ra>
